<compile_context>
chip_gen: v6e
topology: v6e:2x2x1
jax: 0.10.0
libtpu: 0.0.40
codegen_flags: <defaults>
</compile_context>

<pallas_src>
import math

import jax
import jax.numpy as jnp
from jax.experimental import pallas as pl
from jax.experimental.pallas import tpu as pltpu


def _gelu_tanh(u):
    # torch.nn.GELU(approximate='tanh')
    return 0.5 * u * (1.0 + jnp.tanh(0.7978845608028654 * (u + 0.044715 * u * u * u)))


def make_gpt_kernel(TB, S, H, num_heads, eps, parallel_attention_mlp, exact_softmax):
    nh = num_heads
    dh = H // nh
    scale = 1.0 / math.sqrt(dh)
    rows = TB * S
    bf16 = jnp.bfloat16

    def layernorm(v, g, b):
        mu = jnp.mean(v, axis=-1, keepdims=True)
        var = jnp.mean((v - mu) ** 2, axis=-1, keepdims=True)
        return (v - mu) * jax.lax.rsqrt(var + eps) * g + b

    def kernel(x_ref, g1_ref, b1_ref,
               wqkv_t_ref, bqkv_ref, wo_t_ref, bo_ref,
               g2_ref, b2_ref, w1_t_ref, bf1_ref, w2_t_ref, bf2_ref,
               o_ref):
        # (TB, S, H) -> (TB*S, H); merges leading (non-lane) dims only.
        x = x_ref[...].reshape(rows, H)                    # f32

        # ---- self.ln : LayerNorm, then fused QKV projection (bf16 MXU) ----
        a = layernorm(x, g1_ref[...], b1_ref[...])
        qkv = jnp.dot(a.astype(bf16), wqkv_t_ref[...],
                      preferred_element_type=jnp.float32) + bqkv_ref[...]   # (rows, 3H)

        # ---- multi-head self-attention; heads merged into the batch dim ----
        def heads(t):                                      # (rows, H) -> (TB*nh, S, dh) bf16
            t = t.astype(bf16)                             # cast BEFORE relayout
            t = t.reshape(TB, S, nh, dh)
            return jnp.transpose(t, (0, 2, 1, 3)).reshape(TB * nh, S, dh)

        qh = heads(qkv[:, 0 * H:1 * H])
        kh = heads(qkv[:, 1 * H:2 * H])
        vh = heads(qkv[:, 2 * H:3 * H])

        s = jnp.einsum('bqd,bkd->bqk', qh, kh,
                       preferred_element_type=jnp.float32) * scale          # (TB*nh,S,S)
        s = s - jnp.max(s, axis=-1, keepdims=True)
        p = jnp.exp(s)
        denom = jnp.sum(p, axis=-1, keepdims=True)
        if exact_softmax:
            p = p / denom
        else:
            p = p * pl.reciprocal(denom, approx=True)      # EUP slot, ~free
        ctx = jnp.einsum('bqk,bkd->bqd', p.astype(bf16), vh,
                         preferred_element_type=jnp.float32)                # (TB*nh,S,dh)

        # merge heads back; cast to bf16 before the relayout (halves bytes moved)
        ctx = ctx.astype(bf16).reshape(TB, nh, S, dh)
        ctx = jnp.transpose(ctx, (0, 2, 1, 3)).reshape(rows, H)

        # single K=H output projection over all heads at once
        attn = jnp.dot(ctx, wo_t_ref[...],
                       preferred_element_type=jnp.float32) + bo_ref[...]

        # ---- self.ln_mlp : LayerNorm -> fc1 -> gelu(tanh) -> fc2 -----------
        def mlp(v):
            h2 = layernorm(v, g2_ref[...], b2_ref[...])
            t = _gelu_tanh(jnp.dot(h2.astype(bf16), w1_t_ref[...],
                                   preferred_element_type=jnp.float32) + bf1_ref[...])
            return jnp.dot(t.astype(bf16), w2_t_ref[...],
                           preferred_element_type=jnp.float32) + bf2_ref[...]

        # dropout(p=0.1) is identity in eval mode
        if parallel_attention_mlp:
            out = x + attn + mlp(x)
        else:
            x1 = x + attn
            out = x1 + mlp(x1)

        # NOTE: at the toy shape H=32 (<128 lanes) stores are masked vst.msk;
        # production configs should keep H a multiple of 128 for lane-dense stores.
        o_ref[...] = out.reshape(TB, S, H)

    return kernel


def torch_gpt_forward(x_sbh, params, *, num_heads, eps=1e-5,
                      parallel_attention_mlp=False, exact_softmax=False):
    """x_sbh: (S, B, H) float32 (torch batch_first=False layout)."""
    S, B, H = x_sbh.shape
    nh = num_heads
    x_bsh = jnp.transpose(x_sbh, (1, 0, 2)).astype(jnp.float32)   # (B, S, H)

    bf16 = jnp.bfloat16
    f32 = jnp.float32

    # ---- choose the batch tile ---------------------------------------------
    # Approximate per-batch activation footprint (f32): x/LN/attn/residuals,
    # qkv, scores+probs, gelu intermediate.
    per_batch_bytes = (6 * S * H + 3 * S * H + 2 * nh * S * S + 4 * S * H) * 4
    if B * per_batch_bytes <= (8 << 20):
        TB = B          # toy / benchmark shapes: ONE grid step, no per-step overhead
    else:
        TB = 1          # large shapes: one batch per step, pipelined + megacore
    grid = (B // TB,)

    # ---- pack arguments: bf16 weights (half DMA/VMEM), f32 biases/LN params --
    args = (
        x_bsh,
        params["ln_g"].reshape(1, H).astype(f32),
        params["ln_b"].reshape(1, H).astype(f32),
        params["w_qkv"].T.astype(bf16),                    # (H, 3H)
        params["b_qkv"].reshape(1, 3 * H).astype(f32),
        params["w_o"].T.astype(bf16),                      # (H, H)
        params["b_o"].reshape(1, H).astype(f32),
        params["ln2_g"].reshape(1, H).astype(f32),
        params["ln2_b"].reshape(1, H).astype(f32),
        params["w_fc1"].T.astype(bf16),                    # (H, 4H)
        params["b_fc1"].reshape(1, 4 * H).astype(f32),
        params["w_fc2"].T.astype(bf16),                    # (4H, H)
        params["b_fc2"].reshape(1, H).astype(f32),
    )

    weight_bytes = sum(int(a.size) * a.dtype.itemsize for a in args[1:])
    io_tile_bytes = 2 * TB * S * H * 4                     # x tile + out tile (f32)
    interm_bytes = TB * per_batch_bytes
    vmem_limit = int(min(64 << 20,                          # stay legal on v7x
                         max(32 << 20,
                             2 * (weight_bytes + 2 * io_tile_bytes + interm_bytes))))

    kernel = make_gpt_kernel(TB, S, H, num_heads, eps,
                             parallel_attention_mlp, exact_softmax)

    buffered = getattr(pl, "Buffered", None)

    def build(single_buffer_weights):
        def resident(shape):
            # full-array block, constant index -> DMA'd once, stays in VMEM.
            nd = len(shape)
            kwargs = {}
            if single_buffer_weights and buffered is not None:
                kwargs["pipeline_mode"] = buffered(1)       # no double-buffering needed
            return pl.BlockSpec(shape, lambda *gi, _nd=nd: (0,) * _nd, **kwargs)

        in_specs = [pl.BlockSpec((TB, S, H), lambda b: (b, 0, 0))]   # x: one batch tile/step
        in_specs += [resident(a.shape) for a in args[1:]]

        return pl.pallas_call(
            kernel,
            grid=grid,
            out_shape=jax.ShapeDtypeStruct((B, S, H), jnp.float32),
            in_specs=in_specs,
            out_specs=pl.BlockSpec((TB, S, H), lambda b: (b, 0, 0)),
            compiler_params=pltpu.CompilerParams(
                dimension_semantics=("parallel",),
                vmem_limit_bytes=vmem_limit),
        )

    try:
        out = jax.block_until_ready(build(True)(*args))
    except Exception:
        # Fallback if this JAX build rejects pipeline_mode / Buffered(1).
        out = jax.block_until_ready(build(False)(*args))

    return jnp.transpose(out, (1, 0, 2))   # back to (S, B, H)


def ref_forward(x, p, num_heads, eps, parallel):
    """Pure-JAX f32 reference mirroring the PyTorch forward (eval mode)."""
    S, B, H = x.shape
    dh = H // num_heads

    def ln(v, g, b):
        mu = v.mean(-1, keepdims=True)
        var = ((v - mu) ** 2).mean(-1, keepdims=True)
        return (v - mu) / jnp.sqrt(var + eps) * g + b

    a = ln(x, p["ln_g"], p["ln_b"])
    qkv = a @ p["w_qkv"].T + p["b_qkv"]                    # (S, B, 3H)
    q, k, v = jnp.split(qkv, 3, axis=-1)

    def heads(t):                                          # (S,B,H) -> (B,nh,S,dh)
        return t.reshape(S, B, num_heads, dh).transpose(1, 2, 0, 3)

    qh, kh, vh = heads(q), heads(k), heads(v)
    s = jnp.einsum('bnsd,bntd->bnst', qh, kh) / math.sqrt(dh)
    pm = jax.nn.softmax(s, axis=-1)
    ctx = jnp.einsum('bnst,bntd->bnsd', pm, vh)
    ctx = ctx.transpose(2, 0, 1, 3).reshape(S, B, H)
    attn = ctx @ p["w_o"].T + p["b_o"]

    def mlp(u):
        h2 = ln(u, p["ln2_g"], p["ln2_b"])
        t = _gelu_tanh(h2 @ p["w_fc1"].T + p["b_fc1"])
        return t @ p["w_fc2"].T + p["b_fc2"]

    if parallel:
        return x + attn + mlp(x)
    x1 = x + attn
    return x1 + mlp(x1)


if __name__ == "__main__":
    S, B, H, NH = 8, 2, 32, 2            # seq=8, batch=2, hidden=32, heads=2
    EPS = 1e-5

    key = jax.random.PRNGKey(0)
    keys = jax.random.split(key, 16)

    def rnd(k, shape, scale=0.1):
        return jax.random.normal(k, shape, jnp.float32) * scale

    params = {
        "ln_g":  1.0 + rnd(keys[0], (H,)),          # nn.LayerNorm weight
        "ln_b":  rnd(keys[1], (H,)),                # nn.LayerNorm bias
        "w_qkv": rnd(keys[2], (3 * H, H)),          # MHA in_proj_weight
        "b_qkv": rnd(keys[3], (3 * H,)),            # MHA in_proj_bias
        "w_o":   rnd(keys[4], (H, H)),              # MHA out_proj.weight
        "b_o":   rnd(keys[5], (H,)),                # MHA out_proj.bias
        "ln2_g": 1.0 + rnd(keys[6], (H,)),          # ln_mlp LayerNorm weight
        "ln2_b": rnd(keys[7], (H,)),                # ln_mlp LayerNorm bias
        "w_fc1": rnd(keys[8], (4 * H, H)),          # fc1.weight
        "b_fc1": rnd(keys[9], (4 * H,)),            # fc1.bias
        "w_fc2": rnd(keys[10], (H, 4 * H)),         # fc2.weight
        "b_fc2": rnd(keys[11], (H,)),               # fc2.bias
    }
    x = jax.random.normal(keys[12], (S, B, H), jnp.float32)

    out = torch_gpt_forward(x, params, num_heads=NH, eps=EPS,
                            parallel_attention_mlp=False)
    out = jax.block_until_ready(out)

    ref = ref_forward(x, params, NH, EPS, False)
    assert out.shape == (S, B, H)
    # kernel runs matmuls in bf16 (f32 accumulation) + approx softmax reciprocal;
    # allow bf16-level tolerance
    assert jnp.allclose(out, ref, atol=2e-2, rtol=2e-2), \
        float(jnp.max(jnp.abs(out - ref)))
    print("KERNEL_OK")
</pallas_src>

<mosaic_0001>
module attributes {stable_mosaic.version = 11 : i64} {
  func.func @kernel(%arg0: i32, %arg1: memref<2x8x32xf32, #tpu.memory_space<vmem>>, %arg2: memref<1x32xf32, #tpu.memory_space<vmem>>, %arg3: memref<1x32xf32, #tpu.memory_space<vmem>>, %arg4: memref<32x96xbf16, #tpu.memory_space<vmem>>, %arg5: memref<1x96xf32, #tpu.memory_space<vmem>>, %arg6: memref<32x32xbf16, #tpu.memory_space<vmem>>, %arg7: memref<1x32xf32, #tpu.memory_space<vmem>>, %arg8: memref<1x32xf32, #tpu.memory_space<vmem>>, %arg9: memref<1x32xf32, #tpu.memory_space<vmem>>, %arg10: memref<32x128xbf16, #tpu.memory_space<vmem>>, %arg11: memref<1x128xf32, #tpu.memory_space<vmem>>, %arg12: memref<128x32xbf16, #tpu.memory_space<vmem>>, %arg13: memref<1x32xf32, #tpu.memory_space<vmem>>, %arg14: memref<2x8x32xf32, #tpu.memory_space<vmem>>) attributes {dimension_semantics = [#tpu.dimension_semantics<parallel>], iteration_bounds = array<i64: 1>, scalar_prefetch = 0 : i64, scratch_operands = 0 : i64, tpu.core_type = #tpu.core_type<tc>, window_params = [{transform_indices = @transform_0, window_bounds = array<i64: 2, 8, 32>}, {pipeline_mode = #tpu.pipeline_mode<synchronous>, transform_indices = @transform_1, window_bounds = array<i64: 1, 32>}, {pipeline_mode = #tpu.pipeline_mode<synchronous>, transform_indices = @transform_2, window_bounds = array<i64: 1, 32>}, {pipeline_mode = #tpu.pipeline_mode<synchronous>, transform_indices = @transform_3, window_bounds = array<i64: 32, 96>}, {pipeline_mode = #tpu.pipeline_mode<synchronous>, transform_indices = @transform_4, window_bounds = array<i64: 1, 96>}, {pipeline_mode = #tpu.pipeline_mode<synchronous>, transform_indices = @transform_5, window_bounds = array<i64: 32, 32>}, {pipeline_mode = #tpu.pipeline_mode<synchronous>, transform_indices = @transform_6, window_bounds = array<i64: 1, 32>}, {pipeline_mode = #tpu.pipeline_mode<synchronous>, transform_indices = @transform_7, window_bounds = array<i64: 1, 32>}, {pipeline_mode = #tpu.pipeline_mode<synchronous>, transform_indices = @transform_8, window_bounds = array<i64: 1, 32>}, {pipeline_mode = #tpu.pipeline_mode<synchronous>, transform_indices = @transform_9, window_bounds = array<i64: 32, 128>}, {pipeline_mode = #tpu.pipeline_mode<synchronous>, transform_indices = @transform_10, window_bounds = array<i64: 1, 128>}, {pipeline_mode = #tpu.pipeline_mode<synchronous>, transform_indices = @transform_11, window_bounds = array<i64: 128, 32>}, {pipeline_mode = #tpu.pipeline_mode<synchronous>, transform_indices = @transform_12, window_bounds = array<i64: 1, 32>}, {transform_indices = @transform_13, window_bounds = array<i64: 2, 8, 32>}]} {
    %c0 = arith.constant 0 : index
    %c0_0 = arith.constant 0 : index
    %c0_1 = arith.constant 0 : index
    %0 = vector.load %arg1[%c0, %c0_0, %c0_1] : memref<2x8x32xf32, #tpu.memory_space<vmem>>, vector<2x8x32xf32>
    %1 = vector.shape_cast %0 : vector<2x8x32xf32> to vector<16x32xf32>
    %c0_2 = arith.constant 0 : index
    %c0_3 = arith.constant 0 : index
    %2 = vector.load %arg2[%c0_2, %c0_3] : memref<1x32xf32, #tpu.memory_space<vmem>>, vector<1x32xf32>
    %c0_4 = arith.constant 0 : index
    %c0_5 = arith.constant 0 : index
    %3 = vector.load %arg3[%c0_4, %c0_5] : memref<1x32xf32, #tpu.memory_space<vmem>>, vector<1x32xf32>
    %cst = arith.constant dense<0.000000e+00> : vector<16xf32>
    %4 = vector.multi_reduction <add>, %1, %cst [1] : vector<16x32xf32> to vector<16xf32>
    %5 = vector.shape_cast %4 : vector<16xf32> to vector<16x1xf32>
    %cst_6 = arith.constant 3.200000e+01 : f32
    %6 = vector.broadcast %cst_6 : f32 to vector<16x1xf32>
    %7 = arith.divf %5, %6 : vector<16x1xf32>
    %8 = vector.broadcast %7 : vector<16x1xf32> to vector<16x32xf32>
    %9 = arith.subf %1, %8 : vector<16x32xf32>
    %10 = arith.mulf %9, %9 : vector<16x32xf32>
    %cst_7 = arith.constant dense<0.000000e+00> : vector<16xf32>
    %11 = vector.multi_reduction <add>, %10, %cst_7 [1] : vector<16x32xf32> to vector<16xf32>
    %12 = vector.shape_cast %11 : vector<16xf32> to vector<16x1xf32>
    %cst_8 = arith.constant 3.200000e+01 : f32
    %13 = vector.broadcast %cst_8 : f32 to vector<16x1xf32>
    %14 = arith.divf %12, %13 : vector<16x1xf32>
    %15 = vector.broadcast %7 : vector<16x1xf32> to vector<16x32xf32>
    %16 = arith.subf %1, %15 : vector<16x32xf32>
    %cst_9 = arith.constant 9.99999974E-6 : f32
    %17 = vector.broadcast %cst_9 : f32 to vector<16x1xf32>
    %18 = arith.addf %14, %17 : vector<16x1xf32>
    %19 = math.rsqrt %18 : vector<16x1xf32>
    %20 = vector.broadcast %19 : vector<16x1xf32> to vector<16x32xf32>
    %21 = arith.mulf %16, %20 : vector<16x32xf32>
    %22 = vector.broadcast %2 : vector<1x32xf32> to vector<16x32xf32>
    %23 = arith.mulf %21, %22 : vector<16x32xf32>
    %24 = vector.broadcast %3 : vector<1x32xf32> to vector<16x32xf32>
    %25 = arith.addf %23, %24 : vector<16x32xf32>
    %26 = arith.truncf %25 : vector<16x32xf32> to vector<16x32xbf16>
    %c0_10 = arith.constant 0 : index
    %c0_11 = arith.constant 0 : index
    %27 = vector.load %arg4[%c0_10, %c0_11] : memref<32x96xbf16, #tpu.memory_space<vmem>>, vector<32x96xbf16>
    %cst_12 = arith.constant dense<0.000000e+00> : vector<16x96xf32>
    %28 = tpu.matmul %26, %27, %cst_12 {dimension_numbers = #tpu.dot_dimension_numbers<[1], [0], [0], [1], [0, 0, 1, 1], [], []>} : vector<16x32xbf16>, vector<32x96xbf16>, vector<16x96xf32> -> vector<16x96xf32>
    %c0_13 = arith.constant 0 : index
    %c0_14 = arith.constant 0 : index
    %29 = vector.load %arg5[%c0_13, %c0_14] : memref<1x96xf32, #tpu.memory_space<vmem>>, vector<1x96xf32>
    %30 = vector.broadcast %29 : vector<1x96xf32> to vector<16x96xf32>
    %31 = arith.addf %28, %30 : vector<16x96xf32>
    %32 = vector.extract_strided_slice %31 {offsets = [0, 0], sizes = [16, 32], strides = [1, 1]} : vector<16x96xf32> to vector<16x32xf32>
    %33 = arith.truncf %32 : vector<16x32xf32> to vector<16x32xbf16>
    %34 = vector.shape_cast %33 : vector<16x32xbf16> to vector<2x8x2x16xbf16>
    %35 = tpu.transpose %34, [0, 2, 1, 3] : vector<2x8x2x16xbf16> -> vector<2x2x8x16xbf16>
    %36 = vector.shape_cast %35 : vector<2x2x8x16xbf16> to vector<4x8x16xbf16>
    %37 = vector.extract_strided_slice %31 {offsets = [0, 32], sizes = [16, 32], strides = [1, 1]} : vector<16x96xf32> to vector<16x32xf32>
    %38 = arith.truncf %37 : vector<16x32xf32> to vector<16x32xbf16>
    %39 = vector.shape_cast %38 : vector<16x32xbf16> to vector<2x8x2x16xbf16>
    %40 = tpu.transpose %39, [0, 2, 1, 3] : vector<2x8x2x16xbf16> -> vector<2x2x8x16xbf16>
    %41 = vector.shape_cast %40 : vector<2x2x8x16xbf16> to vector<4x8x16xbf16>
    %42 = vector.extract_strided_slice %31 {offsets = [0, 64], sizes = [16, 32], strides = [1, 1]} : vector<16x96xf32> to vector<16x32xf32>
    %43 = arith.truncf %42 : vector<16x32xf32> to vector<16x32xbf16>
    %44 = vector.shape_cast %43 : vector<16x32xbf16> to vector<2x8x2x16xbf16>
    %45 = tpu.transpose %44, [0, 2, 1, 3] : vector<2x8x2x16xbf16> -> vector<2x2x8x16xbf16>
    %46 = vector.shape_cast %45 : vector<2x2x8x16xbf16> to vector<4x8x16xbf16>
    "tpu.trace_start"() <{level = 10 : i32, message = "bqd,bkd->bqk"}> : () -> ()
    %cst_15 = arith.constant dense<0.000000e+00> : vector<4x8x8xf32>
    %47 = tpu.matmul %36, %41, %cst_15 {dimension_numbers = #tpu.dot_dimension_numbers<[2], [2], [1], [1], [0, 0, 0, 1, 1, 1], [0], [0]>} : vector<4x8x16xbf16>, vector<4x8x16xbf16>, vector<4x8x8xf32> -> vector<4x8x8xf32>
    "tpu.trace_stop"() : () -> ()
    %cst_16 = arith.constant 2.500000e-01 : f32
    %48 = vector.broadcast %cst_16 : f32 to vector<4x8x8xf32>
    %49 = arith.mulf %47, %48 : vector<4x8x8xf32>
    %cst_17 = arith.constant dense<0xFF800000> : vector<4x8xf32>
    %50 = vector.multi_reduction <maximumf>, %49, %cst_17 [2] : vector<4x8x8xf32> to vector<4x8xf32>
    %51 = vector.shape_cast %50 : vector<4x8xf32> to vector<4x8x1xf32>
    %52 = vector.broadcast %51 : vector<4x8x1xf32> to vector<4x8x8xf32>
    %53 = arith.subf %49, %52 : vector<4x8x8xf32>
    %54 = math.exp %53 : vector<4x8x8xf32>
    %cst_18 = arith.constant dense<0.000000e+00> : vector<4x8xf32>
    %55 = vector.multi_reduction <add>, %54, %cst_18 [2] : vector<4x8x8xf32> to vector<4x8xf32>
    %56 = vector.shape_cast %55 : vector<4x8xf32> to vector<4x8x1xf32>
    %57 = tpu.reciprocal %56 {approx = true} : vector<4x8x1xf32> -> vector<4x8x1xf32>
    %58 = vector.broadcast %57 : vector<4x8x1xf32> to vector<4x8x8xf32>
    %59 = arith.mulf %54, %58 : vector<4x8x8xf32>
    %60 = arith.truncf %59 : vector<4x8x8xf32> to vector<4x8x8xbf16>
    "tpu.trace_start"() <{level = 10 : i32, message = "bqk,bkd->bqd"}> : () -> ()
    %cst_19 = arith.constant dense<0.000000e+00> : vector<4x8x16xf32>
    %61 = tpu.matmul %60, %46, %cst_19 {dimension_numbers = #tpu.dot_dimension_numbers<[2], [1], [1], [2], [0, 0, 0, 1, 1, 2], [0], [0]>} : vector<4x8x8xbf16>, vector<4x8x16xbf16>, vector<4x8x16xf32> -> vector<4x8x16xf32>
    "tpu.trace_stop"() : () -> ()
    %62 = arith.truncf %61 : vector<4x8x16xf32> to vector<4x8x16xbf16>
    %63 = vector.shape_cast %62 : vector<4x8x16xbf16> to vector<2x2x8x16xbf16>
    %64 = tpu.transpose %63, [0, 2, 1, 3] : vector<2x2x8x16xbf16> -> vector<2x8x2x16xbf16>
    %65 = vector.shape_cast %64 : vector<2x8x2x16xbf16> to vector<16x32xbf16>
    %c0_20 = arith.constant 0 : index
    %c0_21 = arith.constant 0 : index
    %66 = vector.load %arg6[%c0_20, %c0_21] : memref<32x32xbf16, #tpu.memory_space<vmem>>, vector<32x32xbf16>
    %cst_22 = arith.constant dense<0.000000e+00> : vector<16x32xf32>
    %67 = tpu.matmul %65, %66, %cst_22 {dimension_numbers = #tpu.dot_dimension_numbers<[1], [0], [0], [1], [0, 0, 1, 1], [], []>} : vector<16x32xbf16>, vector<32x32xbf16>, vector<16x32xf32> -> vector<16x32xf32>
    %c0_23 = arith.constant 0 : index
    %c0_24 = arith.constant 0 : index
    %68 = vector.load %arg7[%c0_23, %c0_24] : memref<1x32xf32, #tpu.memory_space<vmem>>, vector<1x32xf32>
    %69 = vector.broadcast %68 : vector<1x32xf32> to vector<16x32xf32>
    %70 = arith.addf %67, %69 : vector<16x32xf32>
    %71 = arith.addf %1, %70 : vector<16x32xf32>
    %c0_25 = arith.constant 0 : index
    %c0_26 = arith.constant 0 : index
    %72 = vector.load %arg8[%c0_25, %c0_26] : memref<1x32xf32, #tpu.memory_space<vmem>>, vector<1x32xf32>
    %c0_27 = arith.constant 0 : index
    %c0_28 = arith.constant 0 : index
    %73 = vector.load %arg9[%c0_27, %c0_28] : memref<1x32xf32, #tpu.memory_space<vmem>>, vector<1x32xf32>
    %cst_29 = arith.constant dense<0.000000e+00> : vector<16xf32>
    %74 = vector.multi_reduction <add>, %71, %cst_29 [1] : vector<16x32xf32> to vector<16xf32>
    %75 = vector.shape_cast %74 : vector<16xf32> to vector<16x1xf32>
    %cst_30 = arith.constant 3.200000e+01 : f32
    %76 = vector.broadcast %cst_30 : f32 to vector<16x1xf32>
    %77 = arith.divf %75, %76 : vector<16x1xf32>
    %78 = vector.broadcast %77 : vector<16x1xf32> to vector<16x32xf32>
    %79 = arith.subf %71, %78 : vector<16x32xf32>
    %80 = arith.mulf %79, %79 : vector<16x32xf32>
    %cst_31 = arith.constant dense<0.000000e+00> : vector<16xf32>
    %81 = vector.multi_reduction <add>, %80, %cst_31 [1] : vector<16x32xf32> to vector<16xf32>
    %82 = vector.shape_cast %81 : vector<16xf32> to vector<16x1xf32>
    %cst_32 = arith.constant 3.200000e+01 : f32
    %83 = vector.broadcast %cst_32 : f32 to vector<16x1xf32>
    %84 = arith.divf %82, %83 : vector<16x1xf32>
    %85 = vector.broadcast %77 : vector<16x1xf32> to vector<16x32xf32>
    %86 = arith.subf %71, %85 : vector<16x32xf32>
    %cst_33 = arith.constant 9.99999974E-6 : f32
    %87 = vector.broadcast %cst_33 : f32 to vector<16x1xf32>
    %88 = arith.addf %84, %87 : vector<16x1xf32>
    %89 = math.rsqrt %88 : vector<16x1xf32>
    %90 = vector.broadcast %89 : vector<16x1xf32> to vector<16x32xf32>
    %91 = arith.mulf %86, %90 : vector<16x32xf32>
    %92 = vector.broadcast %72 : vector<1x32xf32> to vector<16x32xf32>
    %93 = arith.mulf %91, %92 : vector<16x32xf32>
    %94 = vector.broadcast %73 : vector<1x32xf32> to vector<16x32xf32>
    %95 = arith.addf %93, %94 : vector<16x32xf32>
    %96 = arith.truncf %95 : vector<16x32xf32> to vector<16x32xbf16>
    %c0_34 = arith.constant 0 : index
    %c0_35 = arith.constant 0 : index
    %97 = vector.load %arg10[%c0_34, %c0_35] : memref<32x128xbf16, #tpu.memory_space<vmem>>, vector<32x128xbf16>
    %cst_36 = arith.constant dense<0.000000e+00> : vector<16x128xf32>
    %98 = tpu.matmul %96, %97, %cst_36 {dimension_numbers = #tpu.dot_dimension_numbers<[1], [0], [0], [1], [0, 0, 1, 1], [], []>} : vector<16x32xbf16>, vector<32x128xbf16>, vector<16x128xf32> -> vector<16x128xf32>
    %c0_37 = arith.constant 0 : index
    %c0_38 = arith.constant 0 : index
    %99 = vector.load %arg11[%c0_37, %c0_38] : memref<1x128xf32, #tpu.memory_space<vmem>>, vector<1x128xf32>
    %100 = vector.broadcast %99 : vector<1x128xf32> to vector<16x128xf32>
    %101 = arith.addf %98, %100 : vector<16x128xf32>
    %cst_39 = arith.constant 5.000000e-01 : f32
    %102 = vector.broadcast %cst_39 : f32 to vector<16x128xf32>
    %103 = arith.mulf %102, %101 : vector<16x128xf32>
    %cst_40 = arith.constant 4.471500e-02 : f32
    %104 = vector.broadcast %cst_40 : f32 to vector<16x128xf32>
    %105 = arith.mulf %104, %101 : vector<16x128xf32>
    %106 = arith.mulf %105, %101 : vector<16x128xf32>
    %107 = arith.mulf %106, %101 : vector<16x128xf32>
    %108 = arith.addf %101, %107 : vector<16x128xf32>
    %cst_41 = arith.constant 0.797884583 : f32
    %109 = vector.broadcast %cst_41 : f32 to vector<16x128xf32>
    %110 = arith.mulf %109, %108 : vector<16x128xf32>
    %111 = math.tanh %110 : vector<16x128xf32>
    %cst_42 = arith.constant 1.000000e+00 : f32
    %112 = vector.broadcast %cst_42 : f32 to vector<16x128xf32>
    %113 = arith.addf %112, %111 : vector<16x128xf32>
    %114 = arith.mulf %103, %113 : vector<16x128xf32>
    %115 = arith.truncf %114 : vector<16x128xf32> to vector<16x128xbf16>
    %c0_43 = arith.constant 0 : index
    %c0_44 = arith.constant 0 : index
    %116 = vector.load %arg12[%c0_43, %c0_44] : memref<128x32xbf16, #tpu.memory_space<vmem>>, vector<128x32xbf16>
    %cst_45 = arith.constant dense<0.000000e+00> : vector<16x32xf32>
    %117 = tpu.matmul %115, %116, %cst_45 {dimension_numbers = #tpu.dot_dimension_numbers<[1], [0], [0], [1], [0, 0, 1, 1], [], []>} : vector<16x128xbf16>, vector<128x32xbf16>, vector<16x32xf32> -> vector<16x32xf32>
    %c0_46 = arith.constant 0 : index
    %c0_47 = arith.constant 0 : index
    %118 = vector.load %arg13[%c0_46, %c0_47] : memref<1x32xf32, #tpu.memory_space<vmem>>, vector<1x32xf32>
    %119 = vector.broadcast %118 : vector<1x32xf32> to vector<16x32xf32>
    %120 = arith.addf %117, %119 : vector<16x32xf32>
    %121 = arith.addf %71, %120 : vector<16x32xf32>
    %122 = vector.shape_cast %121 : vector<16x32xf32> to vector<2x8x32xf32>
    %c0_48 = arith.constant 0 : index
    %c0_49 = arith.constant 0 : index
    %c0_50 = arith.constant 0 : index
    %123 = vector.load %arg14[%c0_48, %c0_49, %c0_50] : memref<2x8x32xf32, #tpu.memory_space<vmem>>, vector<2x8x32xf32>
    tpu.vector_store %arg14[%c0_48, %c0_49, %c0_50], %122 {strides = array<i32>} : memref<2x8x32xf32, #tpu.memory_space<vmem>>, vector<2x8x32xf32>,
    return
  }
  func.func @transform_0(%arg0: i32) -> (i32, i32, i32) {
    %c0_i32 = arith.constant 0 : i32
    %c0_i32_0 = arith.constant 0 : i32
    %c0_i32_1 = arith.constant 0 : i32
    return %arg0, %c0_i32, %c0_i32_0 : i32, i32, i32
  }
  func.func @transform_1(%arg0: i32) -> (i32, i32) {
    %c0_i32 = arith.constant 0 : i32
    %c0_i32_0 = arith.constant 0 : i32
    %c0_i32_1 = arith.constant 0 : i32
    return %c0_i32, %c0_i32_0 : i32, i32
  }
  func.func @transform_2(%arg0: i32) -> (i32, i32) {
    %c0_i32 = arith.constant 0 : i32
    %c0_i32_0 = arith.constant 0 : i32
    %c0_i32_1 = arith.constant 0 : i32
    return %c0_i32, %c0_i32_0 : i32, i32
  }
  func.func @transform_3(%arg0: i32) -> (i32, i32) {
    %c0_i32 = arith.constant 0 : i32
    %c0_i32_0 = arith.constant 0 : i32
    %c0_i32_1 = arith.constant 0 : i32
    return %c0_i32, %c0_i32_0 : i32, i32
  }
  func.func @transform_4(%arg0: i32) -> (i32, i32) {
    %c0_i32 = arith.constant 0 : i32
    %c0_i32_0 = arith.constant 0 : i32
    %c0_i32_1 = arith.constant 0 : i32
    return %c0_i32, %c0_i32_0 : i32, i32
  }
  func.func @transform_5(%arg0: i32) -> (i32, i32) {
    %c0_i32 = arith.constant 0 : i32
    %c0_i32_0 = arith.constant 0 : i32
    %c0_i32_1 = arith.constant 0 : i32
    return %c0_i32, %c0_i32_0 : i32, i32
  }
  func.func @transform_6(%arg0: i32) -> (i32, i32) {
    %c0_i32 = arith.constant 0 : i32
    %c0_i32_0 = arith.constant 0 : i32
    %c0_i32_1 = arith.constant 0 : i32
    return %c0_i32, %c0_i32_0 : i32, i32
  }
  func.func @transform_7(%arg0: i32) -> (i32, i32) {
    %c0_i32 = arith.constant 0 : i32
    %c0_i32_0 = arith.constant 0 : i32
    %c0_i32_1 = arith.constant 0 : i32
    return %c0_i32, %c0_i32_0 : i32, i32
  }
  func.func @transform_8(%arg0: i32) -> (i32, i32) {
    %c0_i32 = arith.constant 0 : i32
    %c0_i32_0 = arith.constant 0 : i32
    %c0_i32_1 = arith.constant 0 : i32
    return %c0_i32, %c0_i32_0 : i32, i32
  }
  func.func @transform_9(%arg0: i32) -> (i32, i32) {
    %c0_i32 = arith.constant 0 : i32
    %c0_i32_0 = arith.constant 0 : i32
    %c0_i32_1 = arith.constant 0 : i32
    return %c0_i32, %c0_i32_0 : i32, i32
  }
  func.func @transform_10(%arg0: i32) -> (i32, i32) {
    %c0_i32 = arith.constant 0 : i32
    %c0_i32_0 = arith.constant 0 : i32
    %c0_i32_1 = arith.constant 0 : i32
    return %c0_i32, %c0_i32_0 : i32, i32
  }
  func.func @transform_11(%arg0: i32) -> (i32, i32) {
    %c0_i32 = arith.constant 0 : i32
    %c0_i32_0 = arith.constant 0 : i32
    %c0_i32_1 = arith.constant 0 : i32
    return %c0_i32, %c0_i32_0 : i32, i32
  }
  func.func @transform_12(%arg0: i32) -> (i32, i32) {
    %c0_i32 = arith.constant 0 : i32
    %c0_i32_0 = arith.constant 0 : i32
    %c0_i32_1 = arith.constant 0 : i32
    return %c0_i32, %c0_i32_0 : i32, i32
  }
  func.func @transform_13(%arg0: i32) -> (i32, i32, i32) {
    %c0_i32 = arith.constant 0 : i32
    %c0_i32_0 = arith.constant 0 : i32
    %c0_i32_1 = arith.constant 0 : i32
    return %arg0, %c0_i32, %c0_i32_0 : i32, i32, i32
  }
}

module attributes {stable_mosaic.version = 11 : i64} {
  func.func @kernel(%arg0: i32, %arg1: memref<2x8x32xf32, #tpu.memory_space<vmem>>, %arg2: memref<1x32xf32, #tpu.memory_space<vmem>>, %arg3: memref<1x32xf32, #tpu.memory_space<vmem>>, %arg4: memref<32x96xbf16, #tpu.memory_space<vmem>>, %arg5: memref<1x96xf32, #tpu.memory_space<vmem>>, %arg6: memref<32x32xbf16, #tpu.memory_space<vmem>>, %arg7: memref<1x32xf32, #tpu.memory_space<vmem>>, %arg8: memref<1x32xf32, #tpu.memory_space<vmem>>, %arg9: memref<1x32xf32, #tpu.memory_space<vmem>>, %arg10: memref<32x128xbf16, #tpu.memory_space<vmem>>, %arg11: memref<1x128xf32, #tpu.memory_space<vmem>>, %arg12: memref<128x32xbf16, #tpu.memory_space<vmem>>, %arg13: memref<1x32xf32, #tpu.memory_space<vmem>>, %arg14: memref<2x8x32xf32, #tpu.memory_space<vmem>>) attributes {dimension_semantics = [#tpu.dimension_semantics<parallel>], iteration_bounds = array<i64: 1>, scalar_prefetch = 0 : i64, scratch_operands = 0 : i64, tpu.core_type = #tpu.core_type<tc>, window_params = [{transform_indices = @transform_0, window_bounds = array<i64: 2, 8, 32>}, {pipeline_mode = #tpu.pipeline_mode<synchronous>, transform_indices = @transform_1, window_bounds = array<i64: 1, 32>}, {pipeline_mode = #tpu.pipeline_mode<synchronous>, transform_indices = @transform_2, window_bounds = array<i64: 1, 32>}, {pipeline_mode = #tpu.pipeline_mode<synchronous>, transform_indices = @transform_3, window_bounds = array<i64: 32, 96>}, {pipeline_mode = #tpu.pipeline_mode<synchronous>, transform_indices = @transform_4, window_bounds = array<i64: 1, 96>}, {pipeline_mode = #tpu.pipeline_mode<synchronous>, transform_indices = @transform_5, window_bounds = array<i64: 32, 32>}, {pipeline_mode = #tpu.pipeline_mode<synchronous>, transform_indices = @transform_6, window_bounds = array<i64: 1, 32>}, {pipeline_mode = #tpu.pipeline_mode<synchronous>, transform_indices = @transform_7, window_bounds = array<i64: 1, 32>}, {pipeline_mode = #tpu.pipeline_mode<synchronous>, transform_indices = @transform_8, window_bounds = array<i64: 1, 32>}, {pipeline_mode = #tpu.pipeline_mode<synchronous>, transform_indices = @transform_9, window_bounds = array<i64: 32, 128>}, {pipeline_mode = #tpu.pipeline_mode<synchronous>, transform_indices = @transform_10, window_bounds = array<i64: 1, 128>}, {pipeline_mode = #tpu.pipeline_mode<synchronous>, transform_indices = @transform_11, window_bounds = array<i64: 128, 32>}, {pipeline_mode = #tpu.pipeline_mode<synchronous>, transform_indices = @transform_12, window_bounds = array<i64: 1, 32>}, {transform_indices = @transform_13, window_bounds = array<i64: 2, 8, 32>}]} {
    %c0 = arith.constant 0 : index
    %c0_0 = arith.constant 0 : index
    %c0_1 = arith.constant 0 : index
    %0 = vector.load %arg1[%c0, %c0_0, %c0_1] : memref<2x8x32xf32, #tpu.memory_space<vmem>>, vector<2x8x32xf32>
    %1 = vector.shape_cast %0 : vector<2x8x32xf32> to vector<16x32xf32>
    %c0_2 = arith.constant 0 : index
    %c0_3 = arith.constant 0 : index
    %2 = vector.load %arg2[%c0_2, %c0_3] : memref<1x32xf32, #tpu.memory_space<vmem>>, vector<1x32xf32>
    %c0_4 = arith.constant 0 : index
    %c0_5 = arith.constant 0 : index
    %3 = vector.load %arg3[%c0_4, %c0_5] : memref<1x32xf32, #tpu.memory_space<vmem>>, vector<1x32xf32>
    %cst = arith.constant dense<0.000000e+00> : vector<16xf32>
    %4 = vector.multi_reduction <add>, %1, %cst [1] : vector<16x32xf32> to vector<16xf32>
    %5 = vector.shape_cast %4 : vector<16xf32> to vector<16x1xf32>
    %cst_6 = arith.constant 3.200000e+01 : f32
    %6 = vector.broadcast %cst_6 : f32 to vector<16x1xf32>
    %7 = arith.divf %5, %6 : vector<16x1xf32>
    %8 = vector.broadcast %7 : vector<16x1xf32> to vector<16x32xf32>
    %9 = arith.subf %1, %8 : vector<16x32xf32>
    %10 = arith.mulf %9, %9 : vector<16x32xf32>
    %cst_7 = arith.constant dense<0.000000e+00> : vector<16xf32>
    %11 = vector.multi_reduction <add>, %10, %cst_7 [1] : vector<16x32xf32> to vector<16xf32>
    %12 = vector.shape_cast %11 : vector<16xf32> to vector<16x1xf32>
    %cst_8 = arith.constant 3.200000e+01 : f32
    %13 = vector.broadcast %cst_8 : f32 to vector<16x1xf32>
    %14 = arith.divf %12, %13 : vector<16x1xf32>
    %15 = vector.broadcast %7 : vector<16x1xf32> to vector<16x32xf32>
    %16 = arith.subf %1, %15 : vector<16x32xf32>
    %cst_9 = arith.constant 9.99999974E-6 : f32
    %17 = vector.broadcast %cst_9 : f32 to vector<16x1xf32>
    %18 = arith.addf %14, %17 : vector<16x1xf32>
    %19 = math.rsqrt %18 : vector<16x1xf32>
    %20 = vector.broadcast %19 : vector<16x1xf32> to vector<16x32xf32>
    %21 = arith.mulf %16, %20 : vector<16x32xf32>
    %22 = vector.broadcast %2 : vector<1x32xf32> to vector<16x32xf32>
    %23 = arith.mulf %21, %22 : vector<16x32xf32>
    %24 = vector.broadcast %3 : vector<1x32xf32> to vector<16x32xf32>
    %25 = arith.addf %23, %24 : vector<16x32xf32>
    %26 = arith.truncf %25 : vector<16x32xf32> to vector<16x32xbf16>
    %c0_10 = arith.constant 0 : index
    %c0_11 = arith.constant 0 : index
    %27 = vector.load %arg4[%c0_10, %c0_11] : memref<32x96xbf16, #tpu.memory_space<vmem>>, vector<32x96xbf16>
    %cst_12 = arith.constant dense<0.000000e+00> : vector<16x96xf32>
    %28 = tpu.matmul %26, %27, %cst_12 {dimension_numbers = #tpu.dot_dimension_numbers<[1], [0], [0], [1], [0, 0, 1, 1], [], []>} : vector<16x32xbf16>, vector<32x96xbf16>, vector<16x96xf32> -> vector<16x96xf32>
    %c0_13 = arith.constant 0 : index
    %c0_14 = arith.constant 0 : index
    %29 = vector.load %arg5[%c0_13, %c0_14] : memref<1x96xf32, #tpu.memory_space<vmem>>, vector<1x96xf32>
    %30 = vector.broadcast %29 : vector<1x96xf32> to vector<16x96xf32>
    %31 = arith.addf %28, %30 : vector<16x96xf32>
    %32 = vector.extract_strided_slice %31 {offsets = [0, 0], sizes = [16, 32], strides = [1, 1]} : vector<16x96xf32> to vector<16x32xf32>
    %33 = arith.truncf %32 : vector<16x32xf32> to vector<16x32xbf16>
    %34 = vector.shape_cast %33 : vector<16x32xbf16> to vector<2x8x2x16xbf16>
    %35 = tpu.transpose %34, [0, 2, 1, 3] : vector<2x8x2x16xbf16> -> vector<2x2x8x16xbf16>
    %36 = vector.shape_cast %35 : vector<2x2x8x16xbf16> to vector<4x8x16xbf16>
    %37 = vector.extract_strided_slice %31 {offsets = [0, 32], sizes = [16, 32], strides = [1, 1]} : vector<16x96xf32> to vector<16x32xf32>
    %38 = arith.truncf %37 : vector<16x32xf32> to vector<16x32xbf16>
    %39 = vector.shape_cast %38 : vector<16x32xbf16> to vector<2x8x2x16xbf16>
    %40 = tpu.transpose %39, [0, 2, 1, 3] : vector<2x8x2x16xbf16> -> vector<2x2x8x16xbf16>
    %41 = vector.shape_cast %40 : vector<2x2x8x16xbf16> to vector<4x8x16xbf16>
    %42 = vector.extract_strided_slice %31 {offsets = [0, 64], sizes = [16, 32], strides = [1, 1]} : vector<16x96xf32> to vector<16x32xf32>
    %43 = arith.truncf %42 : vector<16x32xf32> to vector<16x32xbf16>
    %44 = vector.shape_cast %43 : vector<16x32xbf16> to vector<2x8x2x16xbf16>
    %45 = tpu.transpose %44, [0, 2, 1, 3] : vector<2x8x2x16xbf16> -> vector<2x2x8x16xbf16>
    %46 = vector.shape_cast %45 : vector<2x2x8x16xbf16> to vector<4x8x16xbf16>
    "tpu.trace_start"() <{level = 10 : i32, message = "bqd,bkd->bqk"}> : () -> ()
    %cst_15 = arith.constant dense<0.000000e+00> : vector<4x8x8xf32>
    %47 = tpu.matmul %36, %41, %cst_15 {dimension_numbers = #tpu.dot_dimension_numbers<[2], [2], [1], [1], [0, 0, 0, 1, 1, 1], [0], [0]>} : vector<4x8x16xbf16>, vector<4x8x16xbf16>, vector<4x8x8xf32> -> vector<4x8x8xf32>
    "tpu.trace_stop"() : () -> ()
    %cst_16 = arith.constant 2.500000e-01 : f32
    %48 = vector.broadcast %cst_16 : f32 to vector<4x8x8xf32>
    %49 = arith.mulf %47, %48 : vector<4x8x8xf32>
    %cst_17 = arith.constant dense<0xFF800000> : vector<4x8xf32>
    %50 = vector.multi_reduction <maximumf>, %49, %cst_17 [2] : vector<4x8x8xf32> to vector<4x8xf32>
    %51 = vector.shape_cast %50 : vector<4x8xf32> to vector<4x8x1xf32>
    %52 = vector.broadcast %51 : vector<4x8x1xf32> to vector<4x8x8xf32>
    %53 = arith.subf %49, %52 : vector<4x8x8xf32>
    %54 = math.exp %53 : vector<4x8x8xf32>
    %cst_18 = arith.constant dense<0.000000e+00> : vector<4x8xf32>
    %55 = vector.multi_reduction <add>, %54, %cst_18 [2] : vector<4x8x8xf32> to vector<4x8xf32>
    %56 = vector.shape_cast %55 : vector<4x8xf32> to vector<4x8x1xf32>
    %57 = tpu.reciprocal %56 {approx = true} : vector<4x8x1xf32> -> vector<4x8x1xf32>
    %58 = vector.broadcast %57 : vector<4x8x1xf32> to vector<4x8x8xf32>
    %59 = arith.mulf %54, %58 : vector<4x8x8xf32>
    %60 = arith.truncf %59 : vector<4x8x8xf32> to vector<4x8x8xbf16>
    "tpu.trace_start"() <{level = 10 : i32, message = "bqk,bkd->bqd"}> : () -> ()
    %cst_19 = arith.constant dense<0.000000e+00> : vector<4x8x16xf32>
    %61 = tpu.matmul %60, %46, %cst_19 {dimension_numbers = #tpu.dot_dimension_numbers<[2], [1], [1], [2], [0, 0, 0, 1, 1, 2], [0], [0]>} : vector<4x8x8xbf16>, vector<4x8x16xbf16>, vector<4x8x16xf32> -> vector<4x8x16xf32>
    "tpu.trace_stop"() : () -> ()
    %62 = arith.truncf %61 : vector<4x8x16xf32> to vector<4x8x16xbf16>
    %63 = vector.shape_cast %62 : vector<4x8x16xbf16> to vector<2x2x8x16xbf16>
    %64 = tpu.transpose %63, [0, 2, 1, 3] : vector<2x2x8x16xbf16> -> vector<2x8x2x16xbf16>
    %65 = vector.shape_cast %64 : vector<2x8x2x16xbf16> to vector<16x32xbf16>
    %c0_20 = arith.constant 0 : index
    %c0_21 = arith.constant 0 : index
    %66 = vector.load %arg6[%c0_20, %c0_21] : memref<32x32xbf16, #tpu.memory_space<vmem>>, vector<32x32xbf16>
    %cst_22 = arith.constant dense<0.000000e+00> : vector<16x32xf32>
    %67 = tpu.matmul %65, %66, %cst_22 {dimension_numbers = #tpu.dot_dimension_numbers<[1], [0], [0], [1], [0, 0, 1, 1], [], []>} : vector<16x32xbf16>, vector<32x32xbf16>, vector<16x32xf32> -> vector<16x32xf32>
    %c0_23 = arith.constant 0 : index
    %c0_24 = arith.constant 0 : index
    %68 = vector.load %arg7[%c0_23, %c0_24] : memref<1x32xf32, #tpu.memory_space<vmem>>, vector<1x32xf32>
    %69 = vector.broadcast %68 : vector<1x32xf32> to vector<16x32xf32>
    %70 = arith.addf %67, %69 : vector<16x32xf32>
    %71 = arith.addf %1, %70 : vector<16x32xf32>
    %c0_25 = arith.constant 0 : index
    %c0_26 = arith.constant 0 : index
    %72 = vector.load %arg8[%c0_25, %c0_26] : memref<1x32xf32, #tpu.memory_space<vmem>>, vector<1x32xf32>
    %c0_27 = arith.constant 0 : index
    %c0_28 = arith.constant 0 : index
    %73 = vector.load %arg9[%c0_27, %c0_28] : memref<1x32xf32, #tpu.memory_space<vmem>>, vector<1x32xf32>
    %cst_29 = arith.constant dense<0.000000e+00> : vector<16xf32>
    %74 = vector.multi_reduction <add>, %71, %cst_29 [1] : vector<16x32xf32> to vector<16xf32>
    %75 = vector.shape_cast %74 : vector<16xf32> to vector<16x1xf32>
    %cst_30 = arith.constant 3.200000e+01 : f32
    %76 = vector.broadcast %cst_30 : f32 to vector<16x1xf32>
    %77 = arith.divf %75, %76 : vector<16x1xf32>
    %78 = vector.broadcast %77 : vector<16x1xf32> to vector<16x32xf32>
    %79 = arith.subf %71, %78 : vector<16x32xf32>
    %80 = arith.mulf %79, %79 : vector<16x32xf32>
    %cst_31 = arith.constant dense<0.000000e+00> : vector<16xf32>
    %81 = vector.multi_reduction <add>, %80, %cst_31 [1] : vector<16x32xf32> to vector<16xf32>
    %82 = vector.shape_cast %81 : vector<16xf32> to vector<16x1xf32>
    %cst_32 = arith.constant 3.200000e+01 : f32
    %83 = vector.broadcast %cst_32 : f32 to vector<16x1xf32>
    %84 = arith.divf %82, %83 : vector<16x1xf32>
    %85 = vector.broadcast %77 : vector<16x1xf32> to vector<16x32xf32>
    %86 = arith.subf %71, %85 : vector<16x32xf32>
    %cst_33 = arith.constant 9.99999974E-6 : f32
    %87 = vector.broadcast %cst_33 : f32 to vector<16x1xf32>
    %88 = arith.addf %84, %87 : vector<16x1xf32>
    %89 = math.rsqrt %88 : vector<16x1xf32>
    %90 = vector.broadcast %89 : vector<16x1xf32> to vector<16x32xf32>
    %91 = arith.mulf %86, %90 : vector<16x32xf32>
    %92 = vector.broadcast %72 : vector<1x32xf32> to vector<16x32xf32>
    %93 = arith.mulf %91, %92 : vector<16x32xf32>
    %94 = vector.broadcast %73 : vector<1x32xf32> to vector<16x32xf32>
    %95 = arith.addf %93, %94 : vector<16x32xf32>
    %96 = arith.truncf %95 : vector<16x32xf32> to vector<16x32xbf16>
    %c0_34 = arith.constant 0 : index
    %c0_35 = arith.constant 0 : index
    %97 = vector.load %arg10[%c0_34, %c0_35] : memref<32x128xbf16, #tpu.memory_space<vmem>>, vector<32x128xbf16>
    %cst_36 = arith.constant dense<0.000000e+00> : vector<16x128xf32>
    %98 = tpu.matmul %96, %97, %cst_36 {dimension_numbers = #tpu.dot_dimension_numbers<[1], [0], [0], [1], [0, 0, 1, 1], [], []>} : vector<16x32xbf16>, vector<32x128xbf16>, vector<16x128xf32> -> vector<16x128xf32>
    %c0_37 = arith.constant 0 : index
    %c0_38 = arith.constant 0 : index
    %99 = vector.load %arg11[%c0_37, %c0_38] : memref<1x128xf32, #tpu.memory_space<vmem>>, vector<1x128xf32>
    %100 = vector.broadcast %99 : vector<1x128xf32> to vector<16x128xf32>
    %101 = arith.addf %98, %100 : vector<16x128xf32>
    %cst_39 = arith.constant 5.000000e-01 : f32
    %102 = vector.broadcast %cst_39 : f32 to vector<16x128xf32>
    %103 = arith.mulf %102, %101 : vector<16x128xf32>
    %cst_40 = arith.constant 4.471500e-02 : f32
    %104 = vector.broadcast %cst_40 : f32 to vector<16x128xf32>
    %105 = arith.mulf %104, %101 : vector<16x128xf32>
    %106 = arith.mulf %105, %101 : vector<16x128xf32>
    %107 = arith.mulf %106, %101 : vector<16x128xf32>
    %108 = arith.addf %101, %107 : vector<16x128xf32>
    %cst_41 = arith.constant 0.797884583 : f32
    %109 = vector.broadcast %cst_41 : f32 to vector<16x128xf32>
    %110 = arith.mulf %109, %108 : vector<16x128xf32>
    %111 = math.tanh %110 : vector<16x128xf32>
    %cst_42 = arith.constant 1.000000e+00 : f32
    %112 = vector.broadcast %cst_42 : f32 to vector<16x128xf32>
    %113 = arith.addf %112, %111 : vector<16x128xf32>
    %114 = arith.mulf %103, %113 : vector<16x128xf32>
    %115 = arith.truncf %114 : vector<16x128xf32> to vector<16x128xbf16>
    %c0_43 = arith.constant 0 : index
    %c0_44 = arith.constant 0 : index
    %116 = vector.load %arg12[%c0_43, %c0_44] : memref<128x32xbf16, #tpu.memory_space<vmem>>, vector<128x32xbf16>
    %cst_45 = arith.constant dense<0.000000e+00> : vector<16x32xf32>
    %117 = tpu.matmul %115, %116, %cst_45 {dimension_numbers = #tpu.dot_dimension_numbers<[1], [0], [0], [1], [0, 0, 1, 1], [], []>} : vector<16x128xbf16>, vector<128x32xbf16>, vector<16x32xf32> -> vector<16x32xf32>
    %c0_46 = arith.constant 0 : index
    %c0_47 = arith.constant 0 : index
    %118 = vector.load %arg13[%c0_46, %c0_47] : memref<1x32xf32, #tpu.memory_space<vmem>>, vector<1x32xf32>
    %119 = vector.broadcast %118 : vector<1x32xf32> to vector<16x32xf32>
    %120 = arith.addf %117, %119 : vector<16x32xf32>
    %121 = arith.addf %71, %120 : vector<16x32xf32>
    %122 = vector.shape_cast %121 : vector<16x32xf32> to vector<2x8x32xf32>
    %c0_48 = arith.constant 0 : index
    %c0_49 = arith.constant 0 : index
    %c0_50 = arith.constant 0 : index
    %123 = vector.load %arg14[%c0_48, %c0_49, %c0_50] : memref<2x8x32xf32, #tpu.memory_space<vmem>>, vector<2x8x32xf32>
    tpu.vector_store %arg14[%c0_48, %c0_49, %c0_50], %122 {strides = array<i32>} : memref<2x8x32xf32, #tpu.memory_space<vmem>>, vector<2x8x32xf32>,
    return
  }
  func.func @transform_0(%arg0: i32) -> (i32, i32, i32) {
    %c0_i32 = arith.constant 0 : i32
    %c0_i32_0 = arith.constant 0 : i32
    %c0_i32_1 = arith.constant 0 : i32
    return %arg0, %c0_i32, %c0_i32_0 : i32, i32, i32
  }
  func.func @transform_1(%arg0: i32) -> (i32, i32) {
    %c0_i32 = arith.constant 0 : i32
    %c0_i32_0 = arith.constant 0 : i32
    %c0_i32_1 = arith.constant 0 : i32
    return %c0_i32, %c0_i32_0 : i32, i32
  }
  func.func @transform_2(%arg0: i32) -> (i32, i32) {
    %c0_i32 = arith.constant 0 : i32
    %c0_i32_0 = arith.constant 0 : i32
    %c0_i32_1 = arith.constant 0 : i32
    return %c0_i32, %c0_i32_0 : i32, i32
  }
  func.func @transform_3(%arg0: i32) -> (i32, i32) {
    %c0_i32 = arith.constant 0 : i32
    %c0_i32_0 = arith.constant 0 : i32
    %c0_i32_1 = arith.constant 0 : i32
    return %c0_i32, %c0_i32_0 : i32, i32
  }
  func.func @transform_4(%arg0: i32) -> (i32, i32) {
    %c0_i32 = arith.constant 0 : i32
    %c0_i32_0 = arith.constant 0 : i32
    %c0_i32_1 = arith.constant 0 : i32
    return %c0_i32, %c0_i32_0 : i32, i32
  }
  func.func @transform_5(%arg0: i32) -> (i32, i32) {
    %c0_i32 = arith.constant 0 : i32
    %c0_i32_0 = arith.constant 0 : i32
    %c0_i32_1 = arith.constant 0 : i32
    return %c0_i32, %c0_i32_0 : i32, i32
  }
  func.func @transform_6(%arg0: i32) -> (i32, i32) {
    %c0_i32 = arith.constant 0 : i32
    %c0_i32_0 = arith.constant 0 : i32
    %c0_i32_1 = arith.constant 0 : i32
    return %c0_i32, %c0_i32_0 : i32, i32
  }
  func.func @transform_7(%arg0: i32) -> (i32, i32) {
    %c0_i32 = arith.constant 0 : i32
    %c0_i32_0 = arith.constant 0 : i32
    %c0_i32_1 = arith.constant 0 : i32
    return %c0_i32, %c0_i32_0 : i32, i32
  }
  func.func @transform_8(%arg0: i32) -> (i32, i32) {
    %c0_i32 = arith.constant 0 : i32
    %c0_i32_0 = arith.constant 0 : i32
    %c0_i32_1 = arith.constant 0 : i32
    return %c0_i32, %c0_i32_0 : i32, i32
  }
  func.func @transform_9(%arg0: i32) -> (i32, i32) {
    %c0_i32 = arith.constant 0 : i32
    %c0_i32_0 = arith.constant 0 : i32
    %c0_i32_1 = arith.constant 0 : i32
    return %c0_i32, %c0_i32_0 : i32, i32
  }
  func.func @transform_10(%arg0: i32) -> (i32, i32) {
    %c0_i32 = arith.constant 0 : i32
    %c0_i32_0 = arith.constant 0 : i32
    %c0_i32_1 = arith.constant 0 : i32
    return %c0_i32, %c0_i32_0 : i32, i32
  }
  func.func @transform_11(%arg0: i32) -> (i32, i32) {
    %c0_i32 = arith.constant 0 : i32
    %c0_i32_0 = arith.constant 0 : i32
    %c0_i32_1 = arith.constant 0 : i32
    return %c0_i32, %c0_i32_0 : i32, i32
  }
  func.func @transform_12(%arg0: i32) -> (i32, i32) {
    %c0_i32 = arith.constant 0 : i32
    %c0_i32_0 = arith.constant 0 : i32
    %c0_i32_1 = arith.constant 0 : i32
    return %c0_i32, %c0_i32_0 : i32, i32
  }
  func.func @transform_13(%arg0: i32) -> (i32, i32, i32) {
    %c0_i32 = arith.constant 0 : i32
    %c0_i32_0 = arith.constant 0 : i32
    %c0_i32_1 = arith.constant 0 : i32
    return %arg0, %c0_i32, %c0_i32_0 : i32, i32, i32
  }
}

</mosaic_0001>

<bundles_post_ra>
// kernel: tpu_custom_call.1
= control target key start
LH: loop header
LB: loop body
LE: loop exit
PB: predicated region body
PF: predicated region fallthrough
CT: control target
= control target key end

     0   :  { %vm50_vm0 = vcmask 261120   ;;  %s2522_s0 = inlined_call_operand.vmem [shape: f32[2,8,32], index: 0, kind: input, shape index: {}]   ;;  %s2523_s1 = inlined_call_operand.vmem [shape: f32[1,32], index: 1, kind: input, shape index: {}]   ;;  %s2524_s2 = inlined_call_operand.vmem [shape: f32[1,32], index: 2, kind: input, shape index: {}]   ;;  %s2525_s3 = inlined_call_operand.vmem [shape: bf16[32,96], index: 3, kind: input, shape index: {}]   ;;  %s2526_s4 = inlined_call_operand.vmem [shape: f32[1,96], index: 4, kind: input, shape index: {}]   ;;  %s2527_s5 = inlined_call_operand.vmem [shape: bf16[32,32], index: 5, kind: input, shape index: {}]   ;;  %s2528_s6 = inlined_call_operand.vmem [shape: f32[1,32], index: 6, kind: input, shape index: {}]   ;;  %s2529_s7 = inlined_call_operand.vmem [shape: f32[1,32], index: 7, kind: input, shape index: {}]   ;;  %s2530_s8 = inlined_call_operand.vmem [shape: f32[1,32], index: 8, kind: input, shape index: {}]   ;;  %s2531_s9 = inlined_call_operand.vmem [shape: bf16[32,128], index: 9, kind: input, shape index: {}]   ;;  %s2532_s10 = inlined_call_operand.vmem [shape: f32[1,128], index: 10, kind: input, shape index: {}]   ;;  %s2533_s11 = inlined_call_operand.vmem [shape: bf16[128,32], index: 11, kind: input, shape index: {}]   ;;  %s2534_s12 = inlined_call_operand.vmem [shape: f32[1,32], index: 12, kind: input, shape index: {}]   ;;  %s2535_s13 = inlined_call_operand.hbm [shape: f32[2,8,32], index: 13, kind: output, shape index: {}]  }
   0x1   :  { %v46_v0 = vld [vmem:[%s2522_s0] sm:$0xff]  ;;  %v47_v1 = vld [vmem:[%s2522_s0 + $0x8] sm:$0xff] }
   0x2   :  { %v51_v2 = vsel %vm50_vm0, %v46_v0, 0.0  ;;  %v54_v3 = vsel %vm50_vm0, %v47_v1, 0.0 }
   0x3   :  { %52 = vadd.xlane.f32.xlu0 %v51_v2 }
   0x7   :  { %55 = vadd.xlane.f32.xlu0 %v54_v3 }
   0x8   :  { %18 = vsyncpa [#allocation3], 0  ;;  %v2032_v14 = vld [vmem:[%s2525_s3 + $0x8] sm:$0xff]   ;;  %v2098_v15 = vmov 0.0   ;;  %vm2099_vm1 = vmmov 0   ;;  %v2033_v16 = vld [vmem:[%s2525_s3] sm:$0xff]   ;;  %v184_v45 = vlaneseq }
   0x9   :  { %1928 = vmatprep.subr.bf16.mxu0 %v2098_v15  ;;  %1932 = vmatprep.mubr.msk.bf16.mxu0 %vm2099_vm1, %v2098_v15  ;;  %v1849_v25 = vld [vmem:[%s2523_s1] ss:$0 sm:$0xff]  ;;  %s2100_s1 = smov 96   ;;  %v2102_v43 = vmov 1983009808   ;;  %v2103_v51 = vmov 0  }
   0xa   :  { %1929 = vmatpush3.bf16.msra.mxu0 %v2032_v14  ;;  %1948 = vmatprep.subr.bf16.mxu1 %v2098_v15  ;;  %v1850_v29 = vld [vmem:[%s2524_s2] ss:$0 sm:$0xff]  ;;  %s2101_s2 = smov 112   ;;  %v182_v44 = vunpack.c.l.s4 %v2102_v43  ;;  %v185_v48 = vshrl.u32 %v184_v45, 7  ;;  %v2227_v52 = vpack.i.b16 %v2103_v51, %v2103_v51  ;;  %v2104_v55 = vmov 1934713408  }
   0xb   :  { %1930 = vmatprep.subr.bf16.mxu0 %v2098_v15  ;;  %1950 = vmatprep.mubr.msk.bf16.mxu1 %vm2099_vm1, %v2098_v15  ;;  %v1851_v35 = vld [vmem:[%s2526_s4] ss:$0 sm:$0xff]  ;;  %v197_v56 = vunpack.c.l.s4 %v2104_v55  ;;  %vm822_vm2 = vcmask 130048   ;;  %vm1011_vm3 = vcmask 64512   ;;  %s2105_s4 = smov 64   ;;  %vm1063_vm4 = vcmask 1043456  }
   0xc   :  { %v183_v47 = vunpack.c.0.s8 %v182_v44  ;;  %s2107_s30 = smov [#allocation2]  }
   0xd   :  { %v198_v60 = vunpack.c.0.s8 %v197_v56 }
   0xe   :  { %1931 = vmatpush3.bf16.msra.mxu0 %v2033_v16  ;;  %v2231_v54 = vsub.s32 %v183_v47, %v185_v48 }
   0xf   :  { %1936 = vmatprep.subr.bf16.mxu0 %v2098_v15  ;;  %v2240_v2 = vsub.s32 %v198_v60, %v185_v48 }
  0x8c   :  { %v53_v4 = vpop.xlane.xlu0 %52 }
  0x8d   :  { %v58_v5 = vmul.f32 0.03125, %v53_v4 }
  0x8f   :  { %v60_v6 = vsub.f32 %v46_v0, %v58_v5 }
  0x90   :  { %v56_v7 = vpop.xlane.xlu0 %55 }
  0x91   :  { %v59_v8 = vmul.f32 0.03125, %v56_v7  ;;  %v62_v9 = vmul.f32 %v60_v6, %v60_v6 }
  0x93   :  { %v61_v10 = vsub.f32 %v47_v1, %v59_v8  ;;  %v64_v11 = vsel %vm50_vm0, %v62_v9, 0.0 }
  0x94   :  { %65 = vadd.xlane.f32.xlu1 %v64_v11 }
  0x95   :  { %v63_v12 = vmul.f32 %v61_v10, %v61_v10 }
  0x97   :  { %v67_v13 = vsel %vm50_vm0, %v63_v12, 0.0 }
  0x98   :  { %68 = vadd.xlane.f32.xlu1 %v67_v13 }
 0x11d   :  { %v66_v17 = vpop.xlane.xlu1 %65 }
 0x11e   :  { %v70_v18 = vmul.f32 0.03125, %v66_v17 }
 0x120   :  { %v72_v19 = vadd.f32 1e-05, %v70_v18 }
 0x121   :  { %v69_v20 = vpop.xlane.xlu1 %68 }
 0x122   :  { %2046 = vrsqrt.f32 %v72_v19  ;;  %v71_v21 = vmul.f32 0.03125, %v69_v20 }
 0x124   :  { %v73_v22 = vadd.f32 1e-05, %v71_v21 }
 0x126   :  { %2048 = vrsqrt.f32 %v73_v22 }
 0x12f   :  { %v2047_v23 = vpop.eup %2046 }
 0x130   :  { %v76_v24 = vmul.f32 %v2047_v23, %v60_v6 }
 0x132   :  { %v84_v28 = vmul.f32 %v1849_v25, %v76_v24 }
 0x133   :  { %v2049_v26 = vpop.eup %2048 }
 0x134   :  { %v77_v27 = vmul.f32 %v2049_v26, %v61_v10  ;;  %v92_v31 = vadd.f32 %v1850_v29, %v84_v28 }
 0x136   :  { %v85_v30 = vmul.f32 %v1849_v25, %v77_v27 }
 0x138   :  { %v93_v32 = vadd.f32 %v1850_v29, %v85_v30 }
 0x13a   :  { %v94_v33 = vpack.c.bf16 %v93_v32, %v92_v31 }
 0x13c   :  { %1933 = vmatmul.mubr.msk.bf16.vlgmr.msra.gmra.mxu0 %vm50_vm0, %v94_v33 }
 0x13d   :  { %1938 = vmatprep.mubr.msk.bf16.mxu0 %vm2099_vm1, %v2098_v15 }
 0x1fc   :  { %v155_v34 = vpop.f32.mrf.mxu0 }
 0x1fd   :  { %v156_v38 = vadd.f32 %v1851_v35, %v155_v34 }
 0x1fe   :  { %v1934_v36 = vpop.f32.mrf.mxu0 }
 0x200   :  { %v158_v37 = vpop.f32.mrf.mxu0 }
 0x201   :  { %v159_v39 = vadd.f32 %v1851_v35, %v158_v37 }
 0x202   :  { %v1935_v40 = vpop.f32.mrf.mxu0 }
 0x203   :  { %v2216_v41 = vpack.c.bf16 %v159_v39, %v156_v38 }
 0x205   :  { %386 = vrot.lane.b32.xlu1 %v2216_v41, %s2100_s1  ;;  %164 = vrot.lane.b32.xlu0 %v2216_v41, %s2101_s2  ;;  %v170_v49 = vshrl.u32 %v2216_v41, 16 }
 0x277   :  { %v2220_v42 = vpop.permute.xlu0 %164  ;;  %v387_v61 = vpop.permute.xlu1 %386 }
 0x278   :  { %388 = vrot.lane.b32.xlu1 %v2220_v42, %s2100_s1  ;;  %v171_v46 = vshrl.u32 %v2220_v42, 16  ;;  %v168_v53 = vpack.i.b16 %v2220_v42, %v2216_v41  ;;  %v394_v6 = vshrl.u32 %v387_v61, 16 }
 0x27a   :  { %v172_v50 = vpack.i.b16 %v171_v46, %v170_v49  ;;  %v180_v58 = vcombine.high %v168_v53, %v2227_v52  ;;  %v187_v59 = vrot.slane %v168_v53, %v2231_v54 }
 0x27c   :  { %v229_v57 = vcombine.high %v172_v50, %v2227_v52  ;;  %v236_v62 = vrot.slane %v172_v50, %v2231_v54  ;;  %v194_v0 = vrot.slane %v180_v58, %v2231_v54  ;;  %v195_v1 = vcombine.high %v187_v59, %v2103_v51 }
 0x27d   :  { %v202_v11 = vrot.slane %v187_v59, %v2240_v2 }
 0x27e   :  { %v243_v63 = vrot.slane %v229_v57, %v2231_v54  ;;  %v244_v3 = vcombine.high %v236_v62, %v2103_v51  ;;  %v210_v7 = vcombine.high %v194_v0, %v2103_v51  ;;  %v209_v10 = vrot.slane %v195_v1, %v2240_v2 }
 0x27f   :  { %v2250_v16 = vrot.slane %v194_v0, %v2240_v2  ;;  %v251_v17 = vrot.slane %v236_v62, %v2240_v2 }
 0x280   :  { %v259_v4 = vcombine.high %v243_v63, %v2103_v51  ;;  %v258_v18 = vrot.slane %v244_v3, %v2240_v2  ;;  %v224_v20 = vrot.slane %v210_v7, %v2240_v2  ;;  %v266_v24 = vrot.slane %v243_v63, %v2240_v2 }
 0x281   :  { %v278_v25 = vcombine.low %v202_v11, %v209_v10  ;;  %v1855_v26 = vcombine.high %v202_v11, %v209_v10 }
 0x282   :  { %v273_v19 = vrot.slane %v259_v4, %v2240_v2  ;;  %v302_v32 = vcombine.low %v251_v17, %v258_v18  ;;  %v1856_v33 = vcombine.high %v251_v17, %v258_v18  ;;  %v1857_v1 = vcombine.high %v2250_v16, %v224_v20 }
 0x284   :  { %v350_v35 = vcombine.low %v266_v24, %v273_v19  ;;  %v1858_v56 = vcombine.high %v266_v24, %v273_v19  ;;  %v317_v7 = vrot.slane %v1856_v33, %v2231_v54 }
 0x286   :  { %v357_v10 = vrot.slane %v350_v35, %v2231_v54  ;;  %v365_v11 = vrot.slane %v1858_v56, %v2231_v54 }
 0x288   :  { %v366_v24 = vcombine.low %v357_v10, %v365_v11 }
 0x2ea   :  { %v389_v5 = vpop.permute.xlu1 %388 }
 0x2eb   :  { %v392_v8 = vpack.i.b16 %v389_v5, %v387_v61  ;;  %v395_v9 = vshrl.u32 %v389_v5, 16  ;;  %v326_v61 = vcombine.low %v2250_v16, %v224_v20  ;;  %v341_v20 = vrot.slane %v1857_v1, %v2231_v54 }
 0x2ed   :  { %v396_v12 = vpack.i.b16 %v395_v9, %v394_v6  ;;  %v398_v13 = vcombine.high %v392_v8, %v2227_v52  ;;  %v405_v14 = vrot.slane %v392_v8, %v2231_v54  ;;  %v309_v6 = vrot.slane %v302_v32, %v2231_v54 }
 0x2ee   :  { %v333_v19 = vrot.slane %v326_v61, %v2231_v54  ;;  %v373_v32 = vrot.slane %v366_v24, %v2240_v2 }
 0x2ef   :  { %v412_v21 = vrot.slane %v398_v13, %v2231_v54  ;;  %v413_v22 = vcombine.high %v405_v14, %v2103_v51  ;;  %v447_v23 = vcombine.high %v396_v12, %v2227_v52  ;;  %v454_v27 = vrot.slane %v396_v12, %v2231_v54 }
 0x2f0   :  { %v420_v28 = vrot.slane %v405_v14, %v2240_v2  ;;  %v285_v12 = vrot.slane %v278_v25, %v2231_v54  ;;  %v293_v13 = vrot.slane %v1855_v26, %v2231_v54 }
 0x2f1   :  { %v427_v29 = vrot.slane %v413_v22, %v2240_v2  ;;  %v428_v30 = vcombine.high %v412_v21, %v2103_v51  ;;  %v461_v31 = vrot.slane %v447_v23, %v2231_v54  ;;  %v462_v34 = vcombine.high %v454_v27, %v2103_v51 }
 0x2f2   :  { %v435_v36 = vrot.slane %v412_v21, %v2240_v2  ;;  %v469_v40 = vrot.slane %v454_v27, %v2240_v2  ;;  %v318_v22 = vcombine.low %v309_v6, %v317_v7  ;;  %v294_v27 = vcombine.low %v285_v12, %v293_v13 }
 0x2f3   :  { %v442_v37 = vrot.slane %v428_v30, %v2240_v2  ;;  %v477_v38 = vcombine.high %v461_v31, %v2103_v51  ;;  %v496_v39 = vcombine.low %v420_v28, %v427_v29  ;;  %v476_v43 = vrot.slane %v462_v34, %v2240_v2 }
 0x2f4   :  { %v484_v44 = vrot.slane %v461_v31, %v2240_v2  ;;  %v1859_v45 = vcombine.high %v420_v28, %v427_v29  ;;  %v342_v29 = vcombine.low %v333_v19, %v341_v20  ;;  %v325_v30 = vrot.slane %v318_v22, %v2240_v2 }
 0x2f5   :  { %v491_v46 = vrot.slane %v477_v38, %v2240_v2  ;;  %v503_v47 = vrot.slane %v496_v39, %v2231_v54  ;;  %v544_v48 = vcombine.low %v435_v36, %v442_v37  ;;  %v1861_v49 = vcombine.high %v435_v36, %v442_v37 }
 0x2f6   :  { %v511_v50 = vrot.slane %v1859_v45, %v2231_v54  ;;  %v520_v53 = vcombine.low %v469_v40, %v476_v43  ;;  %v1860_v55 = vcombine.high %v469_v40, %v476_v43  ;;  %v301_v33 = vrot.slane %v294_v27, %v2240_v2 }
 0x2f7   :  { %v551_v57 = vrot.slane %v544_v48, %v2231_v54  ;;  %v559_v58 = vrot.slane %v1861_v49, %v2231_v54  ;;  %v568_v59 = vcombine.low %v484_v44, %v491_v46  ;;  %v1862_v60 = vcombine.high %v484_v44, %v491_v46 }
 0x2f8   :  { %v512_v62 = vcombine.low %v503_v47, %v511_v50  ;;  %v527_v63 = vrot.slane %v520_v53, %v2231_v54  ;;  %v535_v0 = vrot.slane %v1860_v55, %v2231_v54  ;;  %v349_v35 = vrot.slane %v342_v29, %v2240_v2 }
 0x2f9   :  { %v560_v3 = vcombine.low %v551_v57, %v559_v58  ;;  %v575_v4 = vrot.slane %v568_v59, %v2231_v54  ;;  %v583_v5 = vrot.slane %v1862_v60, %v2231_v54  ;;  %v376_v36 = vpack.i.b16 %v325_v30, %v301_v33 }
 0x2fa   :  { %v536_v8 = vcombine.low %v527_v63, %v535_v0  ;;  %v519_v14 = vrot.slane %v512_v62, %v2240_v2  ;;  %v382_v37 = vpack.i.b16 %v373_v32, %v349_v35  ;;  %v378_v43 = vshrl.u32 %v325_v30, 16 }
 0x2fb   :  { %v584_v9 = vcombine.low %v575_v4, %v583_v5  ;;  %v567_v17 = vrot.slane %v560_v3, %v2240_v2  ;;  %v377_v44 = vshrl.u32 %v301_v33, 16  ;;  %v384_v48 = vshrl.u32 %v373_v32, 16 }
 0x2fc   :  { %v543_v16 = vrot.slane %v536_v8, %v2240_v2  ;;  %v595_v31 = vshrl.u32 %v519_v14, 16  ;;  %v383_v49 = vshrl.u32 %v349_v35, 16 }
 0x2fd   :  { %v591_v18 = vrot.slane %v584_v9, %v2240_v2  ;;  %v601_v40 = vshrl.u32 %v567_v17, 16  ;;  %v379_v46 = vpack.i.b16 %v378_v43, %v377_v44 }
 0x2fe   :  { %v594_v21 = vpack.i.b16 %v543_v16, %v519_v14  ;;  %v596_v26 = vshrl.u32 %v543_v16, 16  ;;  %v385_v50 = vpack.i.b16 %v384_v48, %v383_v49 }
 0x2ff   :  { %v600_v23 = vpack.i.b16 %v591_v18, %v567_v17  ;;  %v602_v38 = vshrl.u32 %v591_v18, 16 }
 0x300   :  { %v827_v25 = vsel %vm822_vm2, %v594_v21, 0  ;;  %v597_v34 = vpack.i.b16 %v596_v26, %v595_v31 }
 0x301   :  { %1937 = vmatpush3.bf16.xpose.msra.mxu0 %v827_v25  ;;  %v919_v28 = vsel %vm822_vm2, %v600_v23, 0  ;;  %v603_v45 = vpack.i.b16 %v602_v38, %v601_v40 }
 0x302   :  { %1949 = vmatpush3.bf16.xpose.msra.mxu1 %v919_v28  ;;  %1942 = vmatprep.subr.bf16.mxu0 %v2098_v15  ;;  %v873_v39 = vsel %vm822_vm2, %v597_v34, 0 }
 0x303   :  { %1960 = vmatprep.subr.bf16.mxu1 %v2098_v15  ;;  %v965_v47 = vsel %vm822_vm2, %v603_v45, 0 }
 0x308   :  { %1939 = vmatmul.mubr.msk.bf16.vlgmr.msra.gmra.mxu0 %vm822_vm2, %v376_v36 }
 0x309   :  { %1943 = vmatpush3.bf16.xpose.msra.mxu0 %v873_v39  ;;  %1951 = vmatmul.mubr.msk.bf16.vlgmr.msra.gmra.mxu1 %vm822_vm2, %v382_v37 }
 0x30a   :  { %1944 = vmatprep.mubr.msk.bf16.mxu0 %vm2099_vm1, %v2098_v15  ;;  %1954 = vmatprep.subr.bf16.mxu0 %v2098_v15 }
 0x30b   :  { %1962 = vmatprep.mubr.msk.bf16.mxu1 %vm2099_vm1, %v2098_v15 }
 0x310   :  { %1945 = vmatmul.mubr.msk.bf16.vlgmr.msra.gmra.mxu0 %vm822_vm2, %v379_v46 }
 0x311   :  { %1955 = vmatpush3.bf16.xpose.msra.mxu0 %v965_v47  ;;  %1956 = vmatprep.mubr.msk.bf16.mxu0 %vm2099_vm1, %v2098_v15 }
 0x312   :  { %1966 = vmatprep.subr.bf16.mxu0 %v2098_v15 }
 0x318   :  { %1957 = vmatmul.mubr.msk.bf16.vlgmr.msra.gmra.mxu0 %vm822_vm2, %v385_v50 }
 0x319   :  { %1968 = vmatprep.mubr.msk.bf16.mxu0 %vm2099_vm1, %v2098_v15 }
 0x3c8   :  { %v863_v53 = vpop.f32.mrf.mxu0 }
 0x3c9   :  { %v1007_v55 = vmul.f32 0.25, %v863_v53  ;;  %v955_v56 = vpop.f32.mrf.mxu1 }
 0x3ca   :  { %v1940_v57 = vpop.f32.mrf.mxu0  ;;  %v1009_v4 = vmul.f32 0.25, %v955_v56 }
 0x3cb   :  { %v1952_v58 = vpop.f32.mrf.mxu1  ;;  %v1012_v59 = vsel %vm1011_vm3, %v1007_v55, -inf }
 0x3cc   :  { %1013 = vmax.xlane.f32.xlu1 %v1012_v59  ;;  %v866_v60 = vpop.f32.mrf.mxu0  ;;  %v1018_v8 = vsel %vm1011_vm3, %v1009_v4, -inf }
 0x3cd   :  { %v958_v61 = vpop.f32.mrf.mxu1 }
 0x3ce   :  { %v1941_v62 = vpop.f32.mrf.mxu0 }
 0x3cf   :  { %v1953_v63 = vpop.f32.mrf.mxu1 }
 0x3d0   :  { %v909_v0 = vpop.f32.mrf.mxu0 }
 0x3d1   :  { %v1008_v1 = vmul.f32 0.25, %v909_v0 }
 0x3d2   :  { %v1946_v3 = vpop.f32.mrf.mxu0 }
 0x3d3   :  { %v1015_v5 = vsel %vm1011_vm3, %v1008_v1, -inf }
 0x3d4   :  { %1016 = vmax.xlane.f32.xlu0 %v1015_v5  ;;  %v912_v6 = vpop.f32.mrf.mxu0 }
 0x3d6   :  { %v1947_v7 = vpop.f32.mrf.mxu0 }
 0x3d8   :  { %1019 = vmax.xlane.f32.xlu0 %v1018_v8  ;;  %v1001_v9 = vpop.f32.mrf.mxu0 }
 0x3d9   :  { %v1010_v10 = vmul.f32 0.25, %v1001_v9 }
 0x3da   :  { %v1958_v11 = vpop.f32.mrf.mxu0 }
 0x3db   :  { %v1021_v12 = vsel %vm1011_vm3, %v1010_v10, -inf }
 0x3dc   :  { %1022 = vmax.xlane.f32.xlu0 %v1021_v12  ;;  %v1004_v13 = vpop.f32.mrf.mxu0 }
 0x3de   :  { %v1959_v14 = vpop.f32.mrf.mxu0 }
 0x455   :  { %v1014_v16 = vpop.xlane.xlu1 %1013 }
 0x456   :  { %v1024_v17 = vsub.f32 %v1007_v55, %v1014_v16 }
 0x458   :  { %v1028_v18 = vmul.f32 1.442695, %v1024_v17 }
 0x45a   :  { %2050 = vpow2.f32 %v1028_v18 }
 0x45d   :  { %v1017_v19 = vpop.xlane.xlu0 %1016 }
 0x45e   :  { %v1025_v20 = vsub.f32 %v1008_v1, %v1017_v19 }
 0x460   :  { %v1030_v21 = vmul.f32 1.442695, %v1025_v20 }
 0x461   :  { %v1020_v25 = vpop.xlane.xlu0 %1019 }
 0x462   :  { %2052 = vpow2.f32 %v1030_v21  ;;  %v1026_v26 = vsub.f32 %v1009_v4, %v1020_v25 }
 0x464   :  { %v1032_v28 = vmul.f32 1.442695, %v1026_v26 }
 0x465   :  { %v1023_v29 = vpop.xlane.xlu0 %1022 }
 0x466   :  { %2054 = vpow2.f32 %v1032_v28  ;;  %v1027_v30 = vsub.f32 %v1010_v10, %v1023_v29 }
 0x467   :  { %v2323_v22 = vpop.eup %2050 }
 0x468   :  { %v1036_v23 = vsel %vm1011_vm3, %v2323_v22, 0.0  ;;  %v1034_v31 = vmul.f32 1.442695, %v1027_v30 }
 0x469   :  { %1037 = vadd.xlane.f32.xlu1 %v1036_v23 }
 0x46a   :  { %2056 = vpow2.f32 %v1034_v31 }
 0x46f   :  { %v2327_v24 = vpop.eup %2052 }
 0x470   :  { %v1039_v27 = vsel %vm1011_vm3, %v2327_v24, 0.0 }
 0x471   :  { %1040 = vadd.xlane.f32.xlu0 %v1039_v27 }
 0x473   :  { %v2333_v32 = vpop.eup %2054 }
 0x474   :  { %v1042_v33 = vsel %vm1011_vm3, %v2333_v32, 0.0 }
 0x477   :  { %v2337_v34 = vpop.eup %2056 }
 0x47a   :  { %604 = vrot.lane.b32.xlu1 %v2216_v41, %s2105_s4  ;;  %v1045_v41 = vsel %vm1011_vm3, %v2337_v34, 0.0 }
 0x487   :  { %606 = vrot.lane.b32.xlu0 %v2220_v42, %s2105_s4 }
 0x49e   :  { %1043 = vadd.xlane.f32.xlu1 %v1042_v33 }
 0x4a6   :  { %1046 = vadd.xlane.f32.xlu0 %v1045_v41 }
 0x4f2   :  { %v1038_v35 = vpop.xlane.xlu1 %1037 }
 0x4f3   :  { %2058 = vrcp.f32 %v1038_v35 }
 0x4f6   :  { %v605_v36 = vpop.permute.xlu1 %604 }
 0x4f7   :  { %v612_v38 = vshrl.u32 %v605_v36, 16 }
 0x4fa   :  { %v1041_v42 = vpop.xlane.xlu0 %1040 }
 0x4fb   :  { %2060 = vrcp.f32 %v1041_v42 }
 0x4fe   :  { %v607_v37 = vpop.permute.xlu0 %606 }
 0x4ff   :  { %v610_v39 = vpack.i.b16 %v607_v37, %v605_v36  ;;  %v613_v40 = vshrl.u32 %v607_v37, 16 }
 0x500   :  { %v2059_v23 = vpop.eup %2058 }
 0x501   :  { %v614_v43 = vpack.i.b16 %v613_v40, %v612_v38  ;;  %v616_v44 = vcombine.high %v610_v39, %v2227_v52  ;;  %v623_v45 = vrot.slane %v610_v39, %v2231_v54  ;;  %v1052_v41 = vmul.f32 %v2059_v23, %v2323_v22 }
 0x503   :  { %v630_v46 = vrot.slane %v616_v44, %v2231_v54  ;;  %v631_v47 = vcombine.high %v623_v45, %v2103_v51  ;;  %v665_v48 = vcombine.high %v614_v43, %v2227_v52  ;;  %v672_v49 = vrot.slane %v614_v43, %v2231_v54 }
 0x504   :  { %v638_v50 = vrot.slane %v623_v45, %v2240_v2  ;;  %v1056_v43 = vpack.c.bf16 %v1052_v41, %v1052_v41 }
 0x505   :  { %v645_v53 = vrot.slane %v631_v47, %v2240_v2  ;;  %v646_v55 = vcombine.high %v630_v46, %v2103_v51  ;;  %v679_v56 = vrot.slane %v665_v48, %v2231_v54  ;;  %v680_v57 = vcombine.high %v672_v49, %v2103_v51 }
 0x506   :  { %v653_v58 = vrot.slane %v630_v46, %v2240_v2  ;;  %v687_v52 = vrot.slane %v672_v49, %v2240_v2 }
 0x507   :  { %v660_v59 = vrot.slane %v646_v55, %v2240_v2  ;;  %v695_v60 = vcombine.high %v679_v56, %v2103_v51  ;;  %v714_v61 = vcombine.low %v638_v50, %v645_v53  ;;  %v694_v62 = vrot.slane %v680_v57, %v2240_v2  ;;  %v2034_v57 = vld [vmem:[%s2527_s5 + $0x8] sm:$0xff]  }
 0x508   :  { %v702_v63 = vrot.slane %v679_v56, %v2240_v2  ;;  %v1863_v0 = vcombine.high %v638_v50, %v645_v53  ;;  %v2061_v25 = vpop.eup %2060 }
 0x509   :  { %v709_v1 = vrot.slane %v695_v60, %v2240_v2  ;;  %v721_v3 = vrot.slane %v714_v61, %v2231_v54  ;;  %v762_v4 = vcombine.low %v653_v58, %v660_v59  ;;  %v1865_v5 = vcombine.high %v653_v58, %v660_v59 }
 0x50a   :  { %v729_v6 = vrot.slane %v1863_v0, %v2231_v54  ;;  %v738_v7 = vcombine.low %v687_v52, %v694_v62  ;;  %v1864_v8 = vcombine.high %v687_v52, %v694_v62  ;;  %v1053_v35 = vmul.f32 %v2061_v25, %v2327_v24 }
 0x50b   :  { %v786_v9 = vcombine.low %v702_v63, %v709_v1  ;;  %v1866_v10 = vcombine.high %v702_v63, %v709_v1  ;;  %v769_v11 = vrot.slane %v762_v4, %v2231_v54  ;;  %v777_v12 = vrot.slane %v1865_v5, %v2231_v54 }
 0x50c   :  { %v730_v13 = vcombine.low %v721_v3, %v729_v6  ;;  %v745_v14 = vrot.slane %v738_v7, %v2231_v54  ;;  %v753_v16 = vrot.slane %v1864_v8, %v2231_v54  ;;  %v1057_v45 = vpack.c.bf16 %v1053_v35, %v1053_v35 }
 0x50d   :  { %v778_v17 = vcombine.low %v769_v11, %v777_v12  ;;  %v793_v18 = vrot.slane %v786_v9, %v2231_v54  ;;  %v801_v19 = vrot.slane %v1866_v10, %v2231_v54 }
 0x50e   :  { %v737_v20 = vrot.slane %v730_v13, %v2240_v2  ;;  %v754_v21 = vcombine.low %v745_v14, %v753_v16 }
 0x50f   :  { %v802_v27 = vcombine.low %v793_v18, %v801_v19  ;;  %v785_v28 = vrot.slane %v778_v17, %v2240_v2 }
 0x510   :  { %v761_v26 = vrot.slane %v754_v21, %v2240_v2  ;;  %v813_v31 = vshrl.u32 %v737_v20, 16 }
 0x511   :  { %v809_v29 = vrot.slane %v802_v27, %v2240_v2  ;;  %v819_v39 = vshrl.u32 %v785_v28, 16 }
 0x512   :  { %v812_v30 = vpack.i.b16 %v761_v26, %v737_v20  ;;  %v814_v33 = vshrl.u32 %v761_v26, 16 }
 0x513   :  { %v820_v42 = vshrl.u32 %v809_v29, 16  ;;  %v818_v38 = vpack.i.b16 %v809_v29, %v785_v28 }
 0x514   :  { %v1065_v36 = vsel %vm1063_vm4, %v812_v30, 0  ;;  %v815_v37 = vpack.i.b16 %v814_v33, %v813_v31 }
 0x515   :  { %1961 = vmatpush3.bf16.msra.mxu1 %v1065_v36  ;;  %v821_v44 = vpack.i.b16 %v820_v42, %v819_v39  ;;  %v1157_v22 = vsel %vm1063_vm4, %v818_v38, 0 }
 0x516   :  { %v1111_v40 = vsel %vm1063_vm4, %v815_v37, 0  ;;  %1972 = vmatprep.subr.bf16.mxu1 %v2098_v15 }
 0x517   :  { %1967 = vmatpush3.bf16.msra.mxu0 %v1111_v40  ;;  %v1203_v24 = vsel %vm1063_vm4, %v821_v44, 0 }
 0x518   :  { %1963 = vmatmul.mubr.msk.bf16.vlgmr.msra.gmra.mxu1 %vm1011_vm3, %v1056_v43  ;;  %1978 = vmatprep.subr.bf16.mxu0 %v2098_v15 }
 0x519   :  { %1973 = vmatpush3.bf16.msra.mxu1 %v1157_v22  ;;  %1974 = vmatprep.mubr.msk.bf16.mxu1 %vm2099_vm1, %v2098_v15 }
 0x51a   :  { %1969 = vmatmul.mubr.msk.bf16.vlgmr.msra.gmra.mxu0 %vm1011_vm3, %v1057_v45  ;;  %1984 = vmatprep.subr.bf16.mxu1 %v2098_v15 }
 0x51b   :  { %1979 = vmatpush3.bf16.msra.mxu0 %v1203_v24  ;;  %1980 = vmatprep.mubr.msk.bf16.mxu0 %vm2099_vm1, %v2098_v15 }
 0x51c   :  { %1992 = vmatprep.subr.bf16.mxu0 %v2098_v15 }
 0x527   :  { %v1044_v46 = vpop.xlane.xlu1 %1043 }
 0x528   :  { %2062 = vrcp.f32 %v1044_v46 }
 0x52f   :  { %v1047_v47 = vpop.xlane.xlu0 %1046 }
 0x530   :  { %2064 = vrcp.f32 %v1047_v47 }
 0x535   :  { %v2063_v48 = vpop.eup %2062 }
 0x536   :  { %v1054_v49 = vmul.f32 %v2063_v48, %v2333_v32  ;;  %v2035_v32 = vld [vmem:[%s2527_s5] sm:$0xff]   ;;  %s2106_s5 = smov 16  }
 0x538   :  { %v1058_v50 = vpack.c.bf16 %v1054_v49, %v1054_v49 }
 0x53a   :  { %1975 = vmatmul.mubr.msk.bf16.vlgmr.msra.gmra.mxu1 %vm1011_vm3, %v1058_v50 }
 0x53b   :  { %1988 = vmatprep.mubr.msk.bf16.mxu1 %vm2099_vm1, %v2098_v15  ;;  %1985 = vmatpush3.bf16.msra.mxu1 %v2034_v57 }
 0x53c   :  { %1986 = vmatprep.subr.bf16.mxu1 %v2098_v15 }
 0x53d   :  { %v2065_v53 = vpop.eup %2064 }
 0x53e   :  { %v1055_v55 = vmul.f32 %v2065_v53, %v2337_v34 }
 0x53f   :  { %1987 = vmatpush3.bf16.msra.mxu1 %v2035_v32 }
 0x540   :  { %v1059_v56 = vpack.c.bf16 %v1055_v55, %v1055_v55  ;;  %2000 = vmatprep.subr.bf16.mxu1 %v2098_v15 }
 0x542   :  { %1981 = vmatmul.mubr.msk.bf16.vlgmr.msra.gmra.mxu0 %vm1011_vm3, %v1059_v56 }
 0x543   :  { %1996 = vmatprep.mubr.msk.bf16.mxu0 %vm2099_vm1, %v2098_v15 }
 0x5d8   :  { %v1101_v34 = vpop.f32.mrf.mxu1 }
 0x5d9   :  { %v1245_v1 = vpack.c.bf16 %v1101_v34, %v1101_v34 }
 0x5da   :  { %v1964_v58 = vpop.f32.mrf.mxu1  ;;  %v1147_v59 = vpop.f32.mrf.mxu0 }
 0x5db   :  { %v1270_v0 = vpack.c.bf16 %v1147_v59, %v1147_v59  ;;  %v1252_v4 = vrot.slane %v1245_v1, %v2231_v54 }
 0x5dc   :  { %v1104_v60 = vpop.f32.mrf.mxu1  ;;  %v1970_v61 = vpop.f32.mrf.mxu0 }
 0x5dd   :  { %v1277_v3 = vrot.slane %v1270_v0, %v2231_v54  ;;  %v1253_v6 = vcombine.high %v1252_v4, %v2103_v51  ;;  %v1260_v14 = vrot.slane %v1252_v4, %v2240_v2 }
 0x5de   :  { %v1965_v52 = vpop.f32.mrf.mxu1  ;;  %v1150_v62 = vpop.f32.mrf.mxu0 }
 0x5df   :  { %v1278_v5 = vcombine.high %v1277_v3, %v2103_v51  ;;  %v1267_v10 = vrot.slane %v1253_v6, %v2240_v2  ;;  %v1285_v11 = vrot.slane %v1277_v3, %v2240_v2  ;;  %v1268_v23 = vcombine.high %v1260_v14, %v2103_v51 }
 0x5e0   :  { %v1971_v63 = vpop.f32.mrf.mxu0  ;;  %v1349_v37 = vshrl.u32 %v1260_v14, 16 }
 0x5e1   :  { %v1292_v7 = vrot.slane %v1278_v5, %v2240_v2  ;;  %v1269_v18 = vcombine.high %v1267_v10, %v2103_v51  ;;  %v1293_v19 = vcombine.high %v1285_v11, %v2103_v51  ;;  %v1365_v29 = vshrl.u32 %v1267_v10, 16 }
 0x5e2   :  { %v1350_v41 = vshrl.u32 %v1285_v11, 16  ;;  %v1357_v43 = vshrl.u32 %v1268_v23, 16  ;;  %v1347_v46 = vpack.i.b16 %v1285_v11, %v1260_v14 }
 0x5e3   :  { %v1294_v16 = vcombine.high %v1292_v7, %v2103_v51  ;;  %v1366_v27 = vshrl.u32 %v1292_v7, 16  ;;  %v1373_v33 = vshrl.u32 %v1269_v18, 16  ;;  %v1355_v35 = vpack.i.b16 %v1293_v19, %v1268_v23 }
 0x5e4   :  { %v1358_v42 = vshrl.u32 %v1293_v19, 16  ;;  %v1363_v38 = vpack.i.b16 %v1292_v7, %v1267_v10  ;;  %v1351_v50 = vpack.i.b16 %v1350_v41, %v1349_v37 }
 0x5e5   :  { %v1371_v25 = vpack.i.b16 %v1294_v16, %v1269_v18  ;;  %v1374_v26 = vshrl.u32 %v1294_v16, 16  ;;  %v1367_v44 = vpack.i.b16 %v1366_v27, %v1365_v29 }
 0x5e6   :  { %v1359_v53 = vpack.i.b16 %v1358_v42, %v1357_v43  ;;  %v1409_v56 = vcombine.low %v1347_v46, %v1363_v38 }
 0x5e7   :  { %v1375_v22 = vpack.i.b16 %v1374_v26, %v1373_v33  ;;  %v1417_v45 = vcombine.low %v1355_v35, %v1371_v25  ;;  %v1458_v58 = vcombine.low %v1351_v50, %v1367_v44  ;;  %v1875_v44 = vld [vmem:[%s2528_s6] ss:$0 sm:$0xff] }
 0x5e8   :  { %v1416_v10 = vrot.slane %v1409_v56, %v2231_v54 }
 0x5e9   :  { %v1466_v59 = vcombine.low %v1359_v53, %v1375_v22  ;;  %v1424_v61 = vrot.slane %v1417_v45, %v2231_v54  ;;  %v1465_v19 = vrot.slane %v1458_v58, %v2231_v54  ;;  %v2075_v53 = vld [vmem:[%s2522_s0 + $0x8] sm:$0xff] }
 0x5eb   :  { %v1473_v18 = vrot.slane %v1466_v59, %v2231_v54  ;;  %v1441_v27 = vcombine.low %v1416_v10, %v1424_v61 }
 0x5ed   :  { %v1490_v29 = vcombine.low %v1465_v19, %v1473_v18 }
 0x5ef   :  { %v1497_v35 = vrot.slane %v1490_v29, %v2240_v2  ;;  %v2045_v29 = vld [vmem:[%s2533_s11] sm:$0xff]  }
 0x5fa   :  { %v1193_v8 = vpop.f32.mrf.mxu1 }
 0x5fb   :  { %v1295_v9 = vpack.c.bf16 %v1193_v8, %v1193_v8 }
 0x5fc   :  { %v1976_v12 = vpop.f32.mrf.mxu1 }
 0x5fd   :  { %v1302_v13 = vrot.slane %v1295_v9, %v2231_v54 }
 0x5fe   :  { %v1196_v17 = vpop.f32.mrf.mxu1 }
 0x5ff   :  { %v1303_v21 = vcombine.high %v1302_v13, %v2103_v51  ;;  %v1310_v30 = vrot.slane %v1302_v13, %v2240_v2 }
 0x600   :  { %v1977_v20 = vpop.f32.mrf.mxu1 }
 0x601   :  { %v1317_v39 = vrot.slane %v1303_v21, %v2240_v2  ;;  %v1318_v47 = vcombine.high %v1310_v30, %v2103_v51  ;;  %v1381_v52 = vshrl.u32 %v1310_v30, 16 }
 0x602   :  { %v1239_v28 = vpop.f32.mrf.mxu0 }
 0x603   :  { %v1320_v31 = vpack.c.bf16 %v1239_v28, %v1239_v28  ;;  %v1319_v57 = vcombine.high %v1317_v39, %v2103_v51  ;;  %v1389_v62 = vshrl.u32 %v1318_v47, 16  ;;  %v1397_v1 = vshrl.u32 %v1317_v39, 16 }
 0x604   :  { %v1982_v36 = vpop.f32.mrf.mxu0 }
 0x605   :  { %v1327_v40 = vrot.slane %v1320_v31, %v2231_v54  ;;  %v1405_v6 = vshrl.u32 %v1319_v57, 16 }
 0x606   :  { %v1242_v24 = vpop.f32.mrf.mxu0 }
 0x607   :  { %v1328_v48 = vcombine.high %v1327_v40, %v2103_v51  ;;  %v1335_v49 = vrot.slane %v1327_v40, %v2240_v2  ;;  %v2074_v24 = vld [vmem:[%s2522_s0] sm:$0xff]  ;;  %s1838_s0 = sshll.u32 %s2107_s30, 4  ;;  %s1839_s0 = int_to_ptr.vmem [resolvable:$true] %s1838_s0 }
 0x608   :  { %v1983_v55 = vpop.f32.mrf.mxu0  ;;  %s2076_s6 = scalar_lea.vmem %s1839_s0, 256  ;;  %p2081_p1 = scmp.lt.s32.totalorder %s1839_s0, %s1839_s0 }
 0x609   :  { %v1342_v32 = vrot.slane %v1328_v48, %v2240_v2  ;;  %v1343_v34 = vcombine.high %v1335_v49, %v2103_v51  ;;  %v1382_v60 = vshrl.u32 %v1335_v49, 16  ;;  %v1379_v3 = vpack.i.b16 %v1335_v49, %v1310_v30  ;;  %p2077_p0 = scmp.ne.s32.totalorder %s1839_s0, %s2076_s6  ;;  %p2082_p2 = scmp.lt.s32.totalorder %s2076_s6, %s2076_s6 }
 0x60a   :  { %v1448_v30 = vrot.slane %v1441_v27, %v2240_v2  ;;  %v2041_v27 = vld [vmem:[%s2533_s11 + $0x20] sm:$0xff]  }
 0x60b   :  { %v1344_v63 = vcombine.high %v1342_v32, %v2103_v51  ;;  %v1390_v0 = vshrl.u32 %v1343_v34, 16  ;;  %v1395_v4 = vpack.i.b16 %v1342_v32, %v1317_v39  ;;  %v1398_v5 = vshrl.u32 %v1342_v32, 16  ;;  %p2083_p3 = por %p2082_p2, %p2081_p1 }
 0x60c   :  { %v1387_v7 = vpack.i.b16 %v1343_v34, %v1318_v47  ;;  %v1383_v11 = vpack.i.b16 %v1382_v60, %v1381_v52 }
 0x60d   :  { %v1403_v8 = vpack.i.b16 %v1344_v63, %v1319_v57  ;;  %v1406_v9 = vshrl.u32 %v1344_v63, 16  ;;  %v1399_v12 = vpack.i.b16 %v1398_v5, %v1397_v1  ;;  %v1425_v13 = vcombine.low %v1379_v3, %v1395_v4  ;;  %v2037_v1 = vld [vmem:[%s2531_s9] sm:$0xff]   ;;  %p2084_p4 = pnand %p2083_p3, %p2077_p0 }
 0x60e   :  { %v1391_v14 = vpack.i.b16 %v1390_v0, %v1389_v62  ;;  %v2036_v0 = vld [vmem:[%s2531_s9 + $0x8] sm:$0xff]  }
 0x60f   :  { %v1407_v16 = vpack.i.b16 %v1406_v9, %v1405_v6  ;;  %v1433_v17 = vcombine.low %v1387_v7, %v1403_v8  ;;  %v1474_v51 = vcombine.low %v1383_v11, %v1399_v12  ;;  %v1432_v20 = vrot.slane %v1425_v13, %v2231_v54  ;;  %1993 = vmatpush3.bf16.msra.mxu0 %v2036_v0  ;;  %v1879_v11 = vld [vmem:[%s2529_s7] ss:$0 sm:$0xff] }
 0x610   :  { %1994 = vmatprep.subr.bf16.mxu0 %v2098_v15 }
 0x611   :  { %v1482_v21 = vcombine.low %v1391_v14, %v1407_v16  ;;  %v1440_v23 = vrot.slane %v1433_v17, %v2231_v54  ;;  %v1481_v26 = vrot.slane %v1474_v51, %v2231_v54  ;;  %v1880_v16 = vld [vmem:[%s2530_s8] ss:$0 sm:$0xff] }
 0x613   :  { %v1449_v25 = vcombine.low %v1432_v20, %v1440_v23  ;;  %v1489_v28 = vrot.slane %v1482_v21, %v2231_v54  ;;  %1995 = vmatpush3.bf16.msra.mxu0 %v2037_v1  ;;  %v2038_v20 = vld [vmem:[%s2533_s11 + $0x38] sm:$0xff]   ;;  %v2039_v21 = vld [vmem:[%s2533_s11 + $0x30] sm:$0xff]   ;;  %v2040_v23 = vld [vmem:[%s2533_s11 + $0x28] sm:$0xff]  }
 0x615   :  { %v1456_v31 = vrot.slane %v1449_v25, %v2240_v2  ;;  %v1498_v33 = vcombine.low %v1481_v26, %v1489_v28  ;;  %v2042_v25 = vld [vmem:[%s2533_s11 + $0x18] sm:$0xff]   ;;  %v2043_v26 = vld [vmem:[%s2533_s11 + $0x10] sm:$0xff]   ;;  %v2044_v28 = vld [vmem:[%s2533_s11 + $0x8] sm:$0xff]  }
 0x617   :  { %v1457_v41 = vcombine.low %v1448_v30, %v1456_v31  ;;  %v1505_v42 = vrot.slane %v1498_v33, %v2240_v2  ;;  %v1881_v30 = vld [vmem:[%s2532_s10] ss:$0 sm:$0xff] }
 0x619   :  { %v1506_v36 = vcombine.low %v1497_v35, %v1505_v42  ;;  %v1510_v37 = vshrl.u32 %v1457_v41, 16 }
 0x61b   :  { %v1511_v38 = vshrl.u32 %v1506_v36, 16  ;;  %v1509_v39 = vpack.i.b16 %v1506_v36, %v1457_v41 }
 0x61d   :  { %v1512_v40 = vpack.i.b16 %v1511_v38, %v1510_v37 }
 0x61f   :  { %1513 = vrot.lane.b32.xlu1 %v1512_v40, %s2106_s5 }
 0x691   :  { %v1514_v43 = vpop.permute.xlu1 %1513 }
 0x692   :  { %v1517_v54 = vsel %vm822_vm2, %v1509_v39, %v1514_v43 }
 0x693   :  { %1989 = vmatmul.mubr.msk.bf16.vlgmr.msra.gmra.mxu1 %vm50_vm0, %v1517_v54 }
 0x694   :  { %2016 = vmatprep.mubr.msk.bf16.mxu1 %vm2099_vm1, %v2098_v15  ;;  %2001 = vmatpush3.bf16.msra.mxu1 %v2038_v20 }
 0x695   :  { %2002 = vmatprep.subr.bf16.mxu1 %v2098_v15 }
 0x698   :  { %2003 = vmatpush3.bf16.msra.mxu1 %v2039_v21 }
 0x699   :  { %2004 = vmatprep.subr.bf16.mxu1 %v2098_v15 }
 0x69c   :  { %2005 = vmatpush3.bf16.msra.mxu1 %v2040_v23 }
 0x69d   :  { %2006 = vmatprep.subr.bf16.mxu1 %v2098_v15 }
 0x6a0   :  { %2007 = vmatpush3.bf16.msra.mxu1 %v2041_v27 }
 0x6a1   :  { %2008 = vmatprep.subr.bf16.mxu1 %v2098_v15 }
 0x6a4   :  { %2009 = vmatpush3.bf16.msra.mxu1 %v2042_v25 }
 0x6a5   :  { %2010 = vmatprep.subr.bf16.mxu1 %v2098_v15 }
 0x6a8   :  { %2011 = vmatpush3.bf16.msra.mxu1 %v2043_v26 }
 0x6a9   :  { %2012 = vmatprep.subr.bf16.mxu1 %v2098_v15 }
 0x6ac   :  { %2013 = vmatpush3.bf16.msra.mxu1 %v2044_v28 }
 0x6ad   :  { %2014 = vmatprep.subr.bf16.mxu1 %v2098_v15 }
 0x6b0   :  { %2015 = vmatpush3.bf16.msra.mxu1 %v2045_v29 }
 0x753   :  { %v1577_v2 = vpop.f32.mrf.mxu1 }
 0x754   :  { %v1578_v22 = vadd.f32 %v1875_v44, %v1577_v2 }
 0x755   :  { %v1990_v45 = vpop.f32.mrf.mxu1 }
 0x756   :  { %v2449_v46 = vadd.f32 %v2074_v24, %v1578_v22 }
 0x757   :  { %v1580_v47 = vpop.f32.mrf.mxu1 }
 0x758   :  { %v1581_v48 = vadd.f32 %v1875_v44, %v1580_v47  ;;  %v1588_v49 = vsel %vm50_vm0, %v2449_v46, 0.0 }
 0x759   :  { %1589 = vadd.xlane.f32.xlu0 %v1588_v49  ;;  %v1991_v50 = vpop.f32.mrf.mxu1 }
 0x75a   :  { %v2456_v55 = vadd.f32 %v2075_v53, %v1581_v48 }
 0x75c   :  { %v1591_v56 = vsel %vm50_vm0, %v2456_v55, 0.0 }
 0x75d   :  { %1592 = vadd.xlane.f32.xlu0 %v1591_v56 }
 0x7e2   :  { %v1590_v57 = vpop.xlane.xlu0 %1589 }
 0x7e3   :  { %v1594_v32 = vmul.f32 0.03125, %v1590_v57 }
 0x7e5   :  { %v1596_v34 = vsub.f32 %v2449_v46, %v1594_v32  ;;  %v1885_v32 = vld [vmem:[%s2534_s12] ss:$0 sm:$0xff] }
 0x7e6   :  { %v1593_v58 = vpop.xlane.xlu0 %1592 }
 0x7e7   :  { %v1595_v59 = vmul.f32 0.03125, %v1593_v58  ;;  %v1598_v60 = vmul.f32 %v1596_v34, %v1596_v34 }
 0x7e9   :  { %v1597_v61 = vsub.f32 %v2456_v55, %v1595_v59  ;;  %v1600_v52 = vsel %vm50_vm0, %v1598_v60, 0.0 }
 0x7ea   :  { %1601 = vadd.xlane.f32.xlu0 %v1600_v52 }
 0x7eb   :  { %v1599_v62 = vmul.f32 %v1597_v61, %v1597_v61 }
 0x7ed   :  { %v1603_v63 = vsel %vm50_vm0, %v1599_v62, 0.0 }
 0x7ee   :  { %1604 = vadd.xlane.f32.xlu0 %v1603_v63 }
 0x873   :  { %v1602_v3 = vpop.xlane.xlu0 %1601 }
 0x874   :  { %v1606_v4 = vmul.f32 0.03125, %v1602_v3 }
 0x876   :  { %v1608_v5 = vadd.f32 1e-05, %v1606_v4 }
 0x877   :  { %v1605_v6 = vpop.xlane.xlu0 %1604 }
 0x878   :  { %2066 = vrsqrt.f32 %v1608_v5  ;;  %v1607_v7 = vmul.f32 0.03125, %v1605_v6 }
 0x87a   :  { %v1609_v8 = vadd.f32 1e-05, %v1607_v7 }
 0x87c   :  { %2068 = vrsqrt.f32 %v1609_v8 }
 0x885   :  { %v2067_v9 = vpop.eup %2066 }
 0x886   :  { %v1612_v10 = vmul.f32 %v2067_v9, %v1596_v34 }
 0x888   :  { %v1620_v14 = vmul.f32 %v1879_v11, %v1612_v10 }
 0x889   :  { %v2069_v12 = vpop.eup %2068 }
 0x88a   :  { %v1613_v13 = vmul.f32 %v2069_v12, %v1597_v61  ;;  %v1628_v18 = vadd.f32 %v1880_v16, %v1620_v14 }
 0x88c   :  { %v1621_v17 = vmul.f32 %v1879_v11, %v1613_v13 }
 0x88e   :  { %v1629_v51 = vadd.f32 %v1880_v16, %v1621_v17 }
 0x890   :  { %v1630_v19 = vpack.c.bf16 %v1629_v51, %v1628_v18 }
 0x892   :  { %1997 = vmatmul.mubr.msk.bf16.vlgmr.msra.gmra.mxu0 %vm50_vm0, %v1630_v19 }
 0x952   :  { %v1691_v31 = vpop.f32.mrf.mxu0 }
 0x953   :  { %v1692_v33 = vadd.f32 %v1881_v30, %v1691_v31 }
 0x954   :  { %v1998_v41 = vpop.f32.mrf.mxu0 }
 0x955   :  { %v1700_v35 = vmul.f32 0.044715, %v1692_v33  ;;  %v1698_v48 = vmul.f32 0.5, %v1692_v33 }
 0x956   :  { %v1694_v42 = vpop.f32.mrf.mxu0 }
 0x957   :  { %v1702_v36 = vmul.f32 %v1700_v35, %v1692_v33  ;;  %v1695_v37 = vadd.f32 %v1881_v30, %v1694_v42 }
 0x958   :  { %v1999_v38 = vpop.f32.mrf.mxu0 }
 0x959   :  { %v1704_v39 = vmul.f32 %v1702_v36, %v1692_v33  ;;  %v1701_v40 = vmul.f32 0.044715, %v1695_v37  ;;  %v1699_v49 = vmul.f32 0.5, %v1695_v37 }
 0x95b   :  { %v1706_v43 = vadd.f32 %v1704_v39, %v1692_v33  ;;  %v1703_v54 = vmul.f32 %v1701_v40, %v1695_v37 }
 0x95d   :  { %v1708_v44 = vmul.f32 0.7978846, %v1706_v43  ;;  %v1705_v2 = vmul.f32 %v1703_v54, %v1695_v37 }
 0x95f   :  { %2070 = vtanh.f32 %v1708_v44  ;;  %v1707_v15 = vadd.f32 %v1705_v2, %v1695_v37 }
 0x961   :  { %v1709_v22 = vmul.f32 0.7978846, %v1707_v15 }
 0x963   :  { %2072 = vtanh.f32 %v1709_v22 }
 0x96c   :  { %v2071_v45 = vpop.eup %2070 }
 0x96d   :  { %v1712_v24 = vadd.f32 1.0, %v2071_v45 }
 0x96f   :  { %v1714_v53 = vmul.f32 %v1712_v24, %v1698_v48 }
 0x970   :  { %v2073_v47 = vpop.eup %2072 }
 0x971   :  { %v1713_v50 = vadd.f32 1.0, %v2073_v47 }
 0x973   :  { %v1715_v56 = vmul.f32 %v1713_v50, %v1699_v49 }
 0x975   :  { %v1716_v57 = vpack.c.bf16 %v1715_v56, %v1714_v53 }
 0x977   :  { %2017 = vmatmul.mubr.bf16.vlgmr.msra.gmra.mxu1 %v1716_v57 }
 0xa37   :  { %v1822_v34 = vpop.f32.mrf.mxu1 }
 0xa38   :  { %v1823_v58 = vadd.f32 %v1885_v32, %v1822_v34 }
 0xa39   :  { %v2018_v59 = vpop.f32.mrf.mxu1 }
 0xa3a   :  { %v1829_v60 = vadd.f32 %v1823_v58, %v2449_v46 }
 0xa3b   :  { %v1825_v61 = vpop.f32.mrf.mxu1 }
 0xa3c   :  { %1831 = vst.msk [vmem:[#allocation2] sm:$0xff] %vm50_vm0, %v1829_v60  ;;  %v1826_v52 = vadd.f32 %v1885_v32, %v1825_v61 }
 0xa3d   :  { %v2019_v62 = vpop.f32.mrf.mxu1 }
 0xa3e   :  { %v1830_v63 = vadd.f32 %v1826_v52, %v2456_v55 }
 0xa40   :  { %1832 = vst.msk [vmem:[#allocation2 + $0x8] sm:$0xff] %vm50_vm0, %v1830_v63 }
 0xa41   :  { %2087 = shalt.err (!%p2084_p4)
}
 0xa42   :  { %s2108_s12 = smov 128   ;;  %s2109_s14 = smov 8  }
 0xa43   :  { %1844 = dma.vmem_to_hbm [thread:$0]  %s1839_s0, 256, %s2535_s13, [#allocation3], %s2108_s12, %s2108_s12, %s2109_s14  }
 0xa44   :  { %2096 = dma.done.wait [#allocation3], 256  }
 0xa45   :  { %2097 = vsyncadd [#allocation3], 4294967040 }
 0xa46   :  { %1848 = vsyncpa [#allocation3], 1 }

// kernel: tpu_custom_call.1
= control target key start
LH: loop header
LB: loop body
LE: loop exit
PB: predicated region body
PF: predicated region fallthrough
CT: control target
= control target key end

     0   :  { %vm50_vm0 = vcmask 261120   ;;  %s2522_s0 = inlined_call_operand.vmem [shape: f32[2,8,32], index: 0, kind: input, shape index: {}]   ;;  %s2523_s1 = inlined_call_operand.vmem [shape: f32[1,32], index: 1, kind: input, shape index: {}]   ;;  %s2524_s2 = inlined_call_operand.vmem [shape: f32[1,32], index: 2, kind: input, shape index: {}]   ;;  %s2525_s3 = inlined_call_operand.vmem [shape: bf16[32,96], index: 3, kind: input, shape index: {}]   ;;  %s2526_s4 = inlined_call_operand.vmem [shape: f32[1,96], index: 4, kind: input, shape index: {}]   ;;  %s2527_s5 = inlined_call_operand.vmem [shape: bf16[32,32], index: 5, kind: input, shape index: {}]   ;;  %s2528_s6 = inlined_call_operand.vmem [shape: f32[1,32], index: 6, kind: input, shape index: {}]   ;;  %s2529_s7 = inlined_call_operand.vmem [shape: f32[1,32], index: 7, kind: input, shape index: {}]   ;;  %s2530_s8 = inlined_call_operand.vmem [shape: f32[1,32], index: 8, kind: input, shape index: {}]   ;;  %s2531_s9 = inlined_call_operand.vmem [shape: bf16[32,128], index: 9, kind: input, shape index: {}]   ;;  %s2532_s10 = inlined_call_operand.vmem [shape: f32[1,128], index: 10, kind: input, shape index: {}]   ;;  %s2533_s11 = inlined_call_operand.vmem [shape: bf16[128,32], index: 11, kind: input, shape index: {}]   ;;  %s2534_s12 = inlined_call_operand.vmem [shape: f32[1,32], index: 12, kind: input, shape index: {}]   ;;  %s2535_s13 = inlined_call_operand.hbm [shape: f32[2,8,32], index: 13, kind: output, shape index: {}]  }
   0x1   :  { %v46_v0 = vld [vmem:[%s2522_s0] sm:$0xff]  ;;  %v47_v1 = vld [vmem:[%s2522_s0 + $0x8] sm:$0xff] }
   0x2   :  { %v51_v2 = vsel %vm50_vm0, %v46_v0, 0.0  ;;  %v54_v3 = vsel %vm50_vm0, %v47_v1, 0.0 }
   0x3   :  { %52 = vadd.xlane.f32.xlu0 %v51_v2 }
   0x7   :  { %55 = vadd.xlane.f32.xlu0 %v54_v3 }
   0x8   :  { %18 = vsyncpa [#allocation3], 0  ;;  %v2032_v14 = vld [vmem:[%s2525_s3 + $0x8] sm:$0xff]   ;;  %v2098_v15 = vmov 0.0   ;;  %vm2099_vm1 = vmmov 0   ;;  %v2033_v16 = vld [vmem:[%s2525_s3] sm:$0xff]   ;;  %v184_v45 = vlaneseq }
   0x9   :  { %1928 = vmatprep.subr.bf16.mxu0 %v2098_v15  ;;  %1932 = vmatprep.mubr.msk.bf16.mxu0 %vm2099_vm1, %v2098_v15  ;;  %v1849_v25 = vld [vmem:[%s2523_s1] ss:$0 sm:$0xff]  ;;  %s2100_s1 = smov 96   ;;  %v2102_v43 = vmov 1983009808   ;;  %v2103_v51 = vmov 0  }
   0xa   :  { %1929 = vmatpush3.bf16.msra.mxu0 %v2032_v14  ;;  %1948 = vmatprep.subr.bf16.mxu1 %v2098_v15  ;;  %v1850_v29 = vld [vmem:[%s2524_s2] ss:$0 sm:$0xff]  ;;  %s2101_s2 = smov 112   ;;  %v182_v44 = vunpack.c.l.s4 %v2102_v43  ;;  %v185_v48 = vshrl.u32 %v184_v45, 7  ;;  %v2227_v52 = vpack.i.b16 %v2103_v51, %v2103_v51  ;;  %v2104_v55 = vmov 1934713408  }
   0xb   :  { %1930 = vmatprep.subr.bf16.mxu0 %v2098_v15  ;;  %1950 = vmatprep.mubr.msk.bf16.mxu1 %vm2099_vm1, %v2098_v15  ;;  %v1851_v35 = vld [vmem:[%s2526_s4] ss:$0 sm:$0xff]  ;;  %v197_v56 = vunpack.c.l.s4 %v2104_v55  ;;  %vm822_vm2 = vcmask 130048   ;;  %vm1011_vm3 = vcmask 64512   ;;  %s2105_s4 = smov 64   ;;  %vm1063_vm4 = vcmask 1043456  }
   0xc   :  { %v183_v47 = vunpack.c.0.s8 %v182_v44  ;;  %s2107_s30 = smov [#allocation2]  }
   0xd   :  { %v198_v60 = vunpack.c.0.s8 %v197_v56 }
   0xe   :  { %1931 = vmatpush3.bf16.msra.mxu0 %v2033_v16  ;;  %v2231_v54 = vsub.s32 %v183_v47, %v185_v48 }
   0xf   :  { %1936 = vmatprep.subr.bf16.mxu0 %v2098_v15  ;;  %v2240_v2 = vsub.s32 %v198_v60, %v185_v48 }
  0x8c   :  { %v53_v4 = vpop.xlane.xlu0 %52 }
  0x8d   :  { %v58_v5 = vmul.f32 0.03125, %v53_v4 }
  0x8f   :  { %v60_v6 = vsub.f32 %v46_v0, %v58_v5 }
  0x90   :  { %v56_v7 = vpop.xlane.xlu0 %55 }
  0x91   :  { %v59_v8 = vmul.f32 0.03125, %v56_v7  ;;  %v62_v9 = vmul.f32 %v60_v6, %v60_v6 }
  0x93   :  { %v61_v10 = vsub.f32 %v47_v1, %v59_v8  ;;  %v64_v11 = vsel %vm50_vm0, %v62_v9, 0.0 }
  0x94   :  { %65 = vadd.xlane.f32.xlu1 %v64_v11 }
  0x95   :  { %v63_v12 = vmul.f32 %v61_v10, %v61_v10 }
  0x97   :  { %v67_v13 = vsel %vm50_vm0, %v63_v12, 0.0 }
  0x98   :  { %68 = vadd.xlane.f32.xlu1 %v67_v13 }
 0x11d   :  { %v66_v17 = vpop.xlane.xlu1 %65 }
 0x11e   :  { %v70_v18 = vmul.f32 0.03125, %v66_v17 }
 0x120   :  { %v72_v19 = vadd.f32 1e-05, %v70_v18 }
 0x121   :  { %v69_v20 = vpop.xlane.xlu1 %68 }
 0x122   :  { %2046 = vrsqrt.f32 %v72_v19  ;;  %v71_v21 = vmul.f32 0.03125, %v69_v20 }
 0x124   :  { %v73_v22 = vadd.f32 1e-05, %v71_v21 }
 0x126   :  { %2048 = vrsqrt.f32 %v73_v22 }
 0x12f   :  { %v2047_v23 = vpop.eup %2046 }
 0x130   :  { %v76_v24 = vmul.f32 %v2047_v23, %v60_v6 }
 0x132   :  { %v84_v28 = vmul.f32 %v1849_v25, %v76_v24 }
 0x133   :  { %v2049_v26 = vpop.eup %2048 }
 0x134   :  { %v77_v27 = vmul.f32 %v2049_v26, %v61_v10  ;;  %v92_v31 = vadd.f32 %v1850_v29, %v84_v28 }
 0x136   :  { %v85_v30 = vmul.f32 %v1849_v25, %v77_v27 }
 0x138   :  { %v93_v32 = vadd.f32 %v1850_v29, %v85_v30 }
 0x13a   :  { %v94_v33 = vpack.c.bf16 %v93_v32, %v92_v31 }
 0x13c   :  { %1933 = vmatmul.mubr.msk.bf16.vlgmr.msra.gmra.mxu0 %vm50_vm0, %v94_v33 }
 0x13d   :  { %1938 = vmatprep.mubr.msk.bf16.mxu0 %vm2099_vm1, %v2098_v15 }
 0x1fc   :  { %v155_v34 = vpop.f32.mrf.mxu0 }
 0x1fd   :  { %v156_v38 = vadd.f32 %v1851_v35, %v155_v34 }
 0x1fe   :  { %v1934_v36 = vpop.f32.mrf.mxu0 }
 0x200   :  { %v158_v37 = vpop.f32.mrf.mxu0 }
 0x201   :  { %v159_v39 = vadd.f32 %v1851_v35, %v158_v37 }
 0x202   :  { %v1935_v40 = vpop.f32.mrf.mxu0 }
 0x203   :  { %v2216_v41 = vpack.c.bf16 %v159_v39, %v156_v38 }
 0x205   :  { %386 = vrot.lane.b32.xlu1 %v2216_v41, %s2100_s1  ;;  %164 = vrot.lane.b32.xlu0 %v2216_v41, %s2101_s2  ;;  %v170_v49 = vshrl.u32 %v2216_v41, 16 }
 0x277   :  { %v2220_v42 = vpop.permute.xlu0 %164  ;;  %v387_v61 = vpop.permute.xlu1 %386 }
 0x278   :  { %388 = vrot.lane.b32.xlu1 %v2220_v42, %s2100_s1  ;;  %v171_v46 = vshrl.u32 %v2220_v42, 16  ;;  %v168_v53 = vpack.i.b16 %v2220_v42, %v2216_v41  ;;  %v394_v6 = vshrl.u32 %v387_v61, 16 }
 0x27a   :  { %v172_v50 = vpack.i.b16 %v171_v46, %v170_v49  ;;  %v180_v58 = vcombine.high %v168_v53, %v2227_v52  ;;  %v187_v59 = vrot.slane %v168_v53, %v2231_v54 }
 0x27c   :  { %v229_v57 = vcombine.high %v172_v50, %v2227_v52  ;;  %v236_v62 = vrot.slane %v172_v50, %v2231_v54  ;;  %v194_v0 = vrot.slane %v180_v58, %v2231_v54  ;;  %v195_v1 = vcombine.high %v187_v59, %v2103_v51 }
 0x27d   :  { %v202_v11 = vrot.slane %v187_v59, %v2240_v2 }
 0x27e   :  { %v243_v63 = vrot.slane %v229_v57, %v2231_v54  ;;  %v244_v3 = vcombine.high %v236_v62, %v2103_v51  ;;  %v210_v7 = vcombine.high %v194_v0, %v2103_v51  ;;  %v209_v10 = vrot.slane %v195_v1, %v2240_v2 }
 0x27f   :  { %v2250_v16 = vrot.slane %v194_v0, %v2240_v2  ;;  %v251_v17 = vrot.slane %v236_v62, %v2240_v2 }
 0x280   :  { %v259_v4 = vcombine.high %v243_v63, %v2103_v51  ;;  %v258_v18 = vrot.slane %v244_v3, %v2240_v2  ;;  %v224_v20 = vrot.slane %v210_v7, %v2240_v2  ;;  %v266_v24 = vrot.slane %v243_v63, %v2240_v2 }
 0x281   :  { %v278_v25 = vcombine.low %v202_v11, %v209_v10  ;;  %v1855_v26 = vcombine.high %v202_v11, %v209_v10 }
 0x282   :  { %v273_v19 = vrot.slane %v259_v4, %v2240_v2  ;;  %v302_v32 = vcombine.low %v251_v17, %v258_v18  ;;  %v1856_v33 = vcombine.high %v251_v17, %v258_v18  ;;  %v1857_v1 = vcombine.high %v2250_v16, %v224_v20 }
 0x284   :  { %v350_v35 = vcombine.low %v266_v24, %v273_v19  ;;  %v1858_v56 = vcombine.high %v266_v24, %v273_v19  ;;  %v317_v7 = vrot.slane %v1856_v33, %v2231_v54 }
 0x286   :  { %v357_v10 = vrot.slane %v350_v35, %v2231_v54  ;;  %v365_v11 = vrot.slane %v1858_v56, %v2231_v54 }
 0x288   :  { %v366_v24 = vcombine.low %v357_v10, %v365_v11 }
 0x2ea   :  { %v389_v5 = vpop.permute.xlu1 %388 }
 0x2eb   :  { %v392_v8 = vpack.i.b16 %v389_v5, %v387_v61  ;;  %v395_v9 = vshrl.u32 %v389_v5, 16  ;;  %v326_v61 = vcombine.low %v2250_v16, %v224_v20  ;;  %v341_v20 = vrot.slane %v1857_v1, %v2231_v54 }
 0x2ed   :  { %v396_v12 = vpack.i.b16 %v395_v9, %v394_v6  ;;  %v398_v13 = vcombine.high %v392_v8, %v2227_v52  ;;  %v405_v14 = vrot.slane %v392_v8, %v2231_v54  ;;  %v309_v6 = vrot.slane %v302_v32, %v2231_v54 }
 0x2ee   :  { %v333_v19 = vrot.slane %v326_v61, %v2231_v54  ;;  %v373_v32 = vrot.slane %v366_v24, %v2240_v2 }
 0x2ef   :  { %v412_v21 = vrot.slane %v398_v13, %v2231_v54  ;;  %v413_v22 = vcombine.high %v405_v14, %v2103_v51  ;;  %v447_v23 = vcombine.high %v396_v12, %v2227_v52  ;;  %v454_v27 = vrot.slane %v396_v12, %v2231_v54 }
 0x2f0   :  { %v420_v28 = vrot.slane %v405_v14, %v2240_v2  ;;  %v285_v12 = vrot.slane %v278_v25, %v2231_v54  ;;  %v293_v13 = vrot.slane %v1855_v26, %v2231_v54 }
 0x2f1   :  { %v427_v29 = vrot.slane %v413_v22, %v2240_v2  ;;  %v428_v30 = vcombine.high %v412_v21, %v2103_v51  ;;  %v461_v31 = vrot.slane %v447_v23, %v2231_v54  ;;  %v462_v34 = vcombine.high %v454_v27, %v2103_v51 }
 0x2f2   :  { %v435_v36 = vrot.slane %v412_v21, %v2240_v2  ;;  %v469_v40 = vrot.slane %v454_v27, %v2240_v2  ;;  %v318_v22 = vcombine.low %v309_v6, %v317_v7  ;;  %v294_v27 = vcombine.low %v285_v12, %v293_v13 }
 0x2f3   :  { %v442_v37 = vrot.slane %v428_v30, %v2240_v2  ;;  %v477_v38 = vcombine.high %v461_v31, %v2103_v51  ;;  %v496_v39 = vcombine.low %v420_v28, %v427_v29  ;;  %v476_v43 = vrot.slane %v462_v34, %v2240_v2 }
 0x2f4   :  { %v484_v44 = vrot.slane %v461_v31, %v2240_v2  ;;  %v1859_v45 = vcombine.high %v420_v28, %v427_v29  ;;  %v342_v29 = vcombine.low %v333_v19, %v341_v20  ;;  %v325_v30 = vrot.slane %v318_v22, %v2240_v2 }
 0x2f5   :  { %v491_v46 = vrot.slane %v477_v38, %v2240_v2  ;;  %v503_v47 = vrot.slane %v496_v39, %v2231_v54  ;;  %v544_v48 = vcombine.low %v435_v36, %v442_v37  ;;  %v1861_v49 = vcombine.high %v435_v36, %v442_v37 }
 0x2f6   :  { %v511_v50 = vrot.slane %v1859_v45, %v2231_v54  ;;  %v520_v53 = vcombine.low %v469_v40, %v476_v43  ;;  %v1860_v55 = vcombine.high %v469_v40, %v476_v43  ;;  %v301_v33 = vrot.slane %v294_v27, %v2240_v2 }
 0x2f7   :  { %v551_v57 = vrot.slane %v544_v48, %v2231_v54  ;;  %v559_v58 = vrot.slane %v1861_v49, %v2231_v54  ;;  %v568_v59 = vcombine.low %v484_v44, %v491_v46  ;;  %v1862_v60 = vcombine.high %v484_v44, %v491_v46 }
 0x2f8   :  { %v512_v62 = vcombine.low %v503_v47, %v511_v50  ;;  %v527_v63 = vrot.slane %v520_v53, %v2231_v54  ;;  %v535_v0 = vrot.slane %v1860_v55, %v2231_v54  ;;  %v349_v35 = vrot.slane %v342_v29, %v2240_v2 }
 0x2f9   :  { %v560_v3 = vcombine.low %v551_v57, %v559_v58  ;;  %v575_v4 = vrot.slane %v568_v59, %v2231_v54  ;;  %v583_v5 = vrot.slane %v1862_v60, %v2231_v54  ;;  %v376_v36 = vpack.i.b16 %v325_v30, %v301_v33 }
 0x2fa   :  { %v536_v8 = vcombine.low %v527_v63, %v535_v0  ;;  %v519_v14 = vrot.slane %v512_v62, %v2240_v2  ;;  %v382_v37 = vpack.i.b16 %v373_v32, %v349_v35  ;;  %v378_v43 = vshrl.u32 %v325_v30, 16 }
 0x2fb   :  { %v584_v9 = vcombine.low %v575_v4, %v583_v5  ;;  %v567_v17 = vrot.slane %v560_v3, %v2240_v2  ;;  %v377_v44 = vshrl.u32 %v301_v33, 16  ;;  %v384_v48 = vshrl.u32 %v373_v32, 16 }
 0x2fc   :  { %v543_v16 = vrot.slane %v536_v8, %v2240_v2  ;;  %v595_v31 = vshrl.u32 %v519_v14, 16  ;;  %v383_v49 = vshrl.u32 %v349_v35, 16 }
 0x2fd   :  { %v591_v18 = vrot.slane %v584_v9, %v2240_v2  ;;  %v601_v40 = vshrl.u32 %v567_v17, 16  ;;  %v379_v46 = vpack.i.b16 %v378_v43, %v377_v44 }
 0x2fe   :  { %v594_v21 = vpack.i.b16 %v543_v16, %v519_v14  ;;  %v596_v26 = vshrl.u32 %v543_v16, 16  ;;  %v385_v50 = vpack.i.b16 %v384_v48, %v383_v49 }
 0x2ff   :  { %v600_v23 = vpack.i.b16 %v591_v18, %v567_v17  ;;  %v602_v38 = vshrl.u32 %v591_v18, 16 }
 0x300   :  { %v827_v25 = vsel %vm822_vm2, %v594_v21, 0  ;;  %v597_v34 = vpack.i.b16 %v596_v26, %v595_v31 }
 0x301   :  { %1937 = vmatpush3.bf16.xpose.msra.mxu0 %v827_v25  ;;  %v919_v28 = vsel %vm822_vm2, %v600_v23, 0  ;;  %v603_v45 = vpack.i.b16 %v602_v38, %v601_v40 }
 0x302   :  { %1949 = vmatpush3.bf16.xpose.msra.mxu1 %v919_v28  ;;  %1942 = vmatprep.subr.bf16.mxu0 %v2098_v15  ;;  %v873_v39 = vsel %vm822_vm2, %v597_v34, 0 }
 0x303   :  { %1960 = vmatprep.subr.bf16.mxu1 %v2098_v15  ;;  %v965_v47 = vsel %vm822_vm2, %v603_v45, 0 }
 0x308   :  { %1939 = vmatmul.mubr.msk.bf16.vlgmr.msra.gmra.mxu0 %vm822_vm2, %v376_v36 }
 0x309   :  { %1943 = vmatpush3.bf16.xpose.msra.mxu0 %v873_v39  ;;  %1951 = vmatmul.mubr.msk.bf16.vlgmr.msra.gmra.mxu1 %vm822_vm2, %v382_v37 }
 0x30a   :  { %1944 = vmatprep.mubr.msk.bf16.mxu0 %vm2099_vm1, %v2098_v15  ;;  %1954 = vmatprep.subr.bf16.mxu0 %v2098_v15 }
 0x30b   :  { %1962 = vmatprep.mubr.msk.bf16.mxu1 %vm2099_vm1, %v2098_v15 }
 0x310   :  { %1945 = vmatmul.mubr.msk.bf16.vlgmr.msra.gmra.mxu0 %vm822_vm2, %v379_v46 }
 0x311   :  { %1955 = vmatpush3.bf16.xpose.msra.mxu0 %v965_v47  ;;  %1956 = vmatprep.mubr.msk.bf16.mxu0 %vm2099_vm1, %v2098_v15 }
 0x312   :  { %1966 = vmatprep.subr.bf16.mxu0 %v2098_v15 }
 0x318   :  { %1957 = vmatmul.mubr.msk.bf16.vlgmr.msra.gmra.mxu0 %vm822_vm2, %v385_v50 }
 0x319   :  { %1968 = vmatprep.mubr.msk.bf16.mxu0 %vm2099_vm1, %v2098_v15 }
 0x3c8   :  { %v863_v53 = vpop.f32.mrf.mxu0 }
 0x3c9   :  { %v1007_v55 = vmul.f32 0.25, %v863_v53  ;;  %v955_v56 = vpop.f32.mrf.mxu1 }
 0x3ca   :  { %v1940_v57 = vpop.f32.mrf.mxu0  ;;  %v1009_v4 = vmul.f32 0.25, %v955_v56 }
 0x3cb   :  { %v1952_v58 = vpop.f32.mrf.mxu1  ;;  %v1012_v59 = vsel %vm1011_vm3, %v1007_v55, -inf }
 0x3cc   :  { %1013 = vmax.xlane.f32.xlu1 %v1012_v59  ;;  %v866_v60 = vpop.f32.mrf.mxu0  ;;  %v1018_v8 = vsel %vm1011_vm3, %v1009_v4, -inf }
 0x3cd   :  { %v958_v61 = vpop.f32.mrf.mxu1 }
 0x3ce   :  { %v1941_v62 = vpop.f32.mrf.mxu0 }
 0x3cf   :  { %v1953_v63 = vpop.f32.mrf.mxu1 }
 0x3d0   :  { %v909_v0 = vpop.f32.mrf.mxu0 }
 0x3d1   :  { %v1008_v1 = vmul.f32 0.25, %v909_v0 }
 0x3d2   :  { %v1946_v3 = vpop.f32.mrf.mxu0 }
 0x3d3   :  { %v1015_v5 = vsel %vm1011_vm3, %v1008_v1, -inf }
 0x3d4   :  { %1016 = vmax.xlane.f32.xlu0 %v1015_v5  ;;  %v912_v6 = vpop.f32.mrf.mxu0 }
 0x3d6   :  { %v1947_v7 = vpop.f32.mrf.mxu0 }
 0x3d8   :  { %1019 = vmax.xlane.f32.xlu0 %v1018_v8  ;;  %v1001_v9 = vpop.f32.mrf.mxu0 }
 0x3d9   :  { %v1010_v10 = vmul.f32 0.25, %v1001_v9 }
 0x3da   :  { %v1958_v11 = vpop.f32.mrf.mxu0 }
 0x3db   :  { %v1021_v12 = vsel %vm1011_vm3, %v1010_v10, -inf }
 0x3dc   :  { %1022 = vmax.xlane.f32.xlu0 %v1021_v12  ;;  %v1004_v13 = vpop.f32.mrf.mxu0 }
 0x3de   :  { %v1959_v14 = vpop.f32.mrf.mxu0 }
 0x455   :  { %v1014_v16 = vpop.xlane.xlu1 %1013 }
 0x456   :  { %v1024_v17 = vsub.f32 %v1007_v55, %v1014_v16 }
 0x458   :  { %v1028_v18 = vmul.f32 1.442695, %v1024_v17 }
 0x45a   :  { %2050 = vpow2.f32 %v1028_v18 }
 0x45d   :  { %v1017_v19 = vpop.xlane.xlu0 %1016 }
 0x45e   :  { %v1025_v20 = vsub.f32 %v1008_v1, %v1017_v19 }
 0x460   :  { %v1030_v21 = vmul.f32 1.442695, %v1025_v20 }
 0x461   :  { %v1020_v25 = vpop.xlane.xlu0 %1019 }
 0x462   :  { %2052 = vpow2.f32 %v1030_v21  ;;  %v1026_v26 = vsub.f32 %v1009_v4, %v1020_v25 }
 0x464   :  { %v1032_v28 = vmul.f32 1.442695, %v1026_v26 }
 0x465   :  { %v1023_v29 = vpop.xlane.xlu0 %1022 }
 0x466   :  { %2054 = vpow2.f32 %v1032_v28  ;;  %v1027_v30 = vsub.f32 %v1010_v10, %v1023_v29 }
 0x467   :  { %v2323_v22 = vpop.eup %2050 }
 0x468   :  { %v1036_v23 = vsel %vm1011_vm3, %v2323_v22, 0.0  ;;  %v1034_v31 = vmul.f32 1.442695, %v1027_v30 }
 0x469   :  { %1037 = vadd.xlane.f32.xlu1 %v1036_v23 }
 0x46a   :  { %2056 = vpow2.f32 %v1034_v31 }
 0x46f   :  { %v2327_v24 = vpop.eup %2052 }
 0x470   :  { %v1039_v27 = vsel %vm1011_vm3, %v2327_v24, 0.0 }
 0x471   :  { %1040 = vadd.xlane.f32.xlu0 %v1039_v27 }
 0x473   :  { %v2333_v32 = vpop.eup %2054 }
 0x474   :  { %v1042_v33 = vsel %vm1011_vm3, %v2333_v32, 0.0 }
 0x477   :  { %v2337_v34 = vpop.eup %2056 }
 0x47a   :  { %604 = vrot.lane.b32.xlu1 %v2216_v41, %s2105_s4  ;;  %v1045_v41 = vsel %vm1011_vm3, %v2337_v34, 0.0 }
 0x487   :  { %606 = vrot.lane.b32.xlu0 %v2220_v42, %s2105_s4 }
 0x49e   :  { %1043 = vadd.xlane.f32.xlu1 %v1042_v33 }
 0x4a6   :  { %1046 = vadd.xlane.f32.xlu0 %v1045_v41 }
 0x4f2   :  { %v1038_v35 = vpop.xlane.xlu1 %1037 }
 0x4f3   :  { %2058 = vrcp.f32 %v1038_v35 }
 0x4f6   :  { %v605_v36 = vpop.permute.xlu1 %604 }
 0x4f7   :  { %v612_v38 = vshrl.u32 %v605_v36, 16 }
 0x4fa   :  { %v1041_v42 = vpop.xlane.xlu0 %1040 }
 0x4fb   :  { %2060 = vrcp.f32 %v1041_v42 }
 0x4fe   :  { %v607_v37 = vpop.permute.xlu0 %606 }
 0x4ff   :  { %v610_v39 = vpack.i.b16 %v607_v37, %v605_v36  ;;  %v613_v40 = vshrl.u32 %v607_v37, 16 }
 0x500   :  { %v2059_v23 = vpop.eup %2058 }
 0x501   :  { %v614_v43 = vpack.i.b16 %v613_v40, %v612_v38  ;;  %v616_v44 = vcombine.high %v610_v39, %v2227_v52  ;;  %v623_v45 = vrot.slane %v610_v39, %v2231_v54  ;;  %v1052_v41 = vmul.f32 %v2059_v23, %v2323_v22 }
 0x503   :  { %v630_v46 = vrot.slane %v616_v44, %v2231_v54  ;;  %v631_v47 = vcombine.high %v623_v45, %v2103_v51  ;;  %v665_v48 = vcombine.high %v614_v43, %v2227_v52  ;;  %v672_v49 = vrot.slane %v614_v43, %v2231_v54 }
 0x504   :  { %v638_v50 = vrot.slane %v623_v45, %v2240_v2  ;;  %v1056_v43 = vpack.c.bf16 %v1052_v41, %v1052_v41 }
 0x505   :  { %v645_v53 = vrot.slane %v631_v47, %v2240_v2  ;;  %v646_v55 = vcombine.high %v630_v46, %v2103_v51  ;;  %v679_v56 = vrot.slane %v665_v48, %v2231_v54  ;;  %v680_v57 = vcombine.high %v672_v49, %v2103_v51 }
 0x506   :  { %v653_v58 = vrot.slane %v630_v46, %v2240_v2  ;;  %v687_v52 = vrot.slane %v672_v49, %v2240_v2 }
 0x507   :  { %v660_v59 = vrot.slane %v646_v55, %v2240_v2  ;;  %v695_v60 = vcombine.high %v679_v56, %v2103_v51  ;;  %v714_v61 = vcombine.low %v638_v50, %v645_v53  ;;  %v694_v62 = vrot.slane %v680_v57, %v2240_v2  ;;  %v2034_v57 = vld [vmem:[%s2527_s5 + $0x8] sm:$0xff]  }
 0x508   :  { %v702_v63 = vrot.slane %v679_v56, %v2240_v2  ;;  %v1863_v0 = vcombine.high %v638_v50, %v645_v53  ;;  %v2061_v25 = vpop.eup %2060 }
 0x509   :  { %v709_v1 = vrot.slane %v695_v60, %v2240_v2  ;;  %v721_v3 = vrot.slane %v714_v61, %v2231_v54  ;;  %v762_v4 = vcombine.low %v653_v58, %v660_v59  ;;  %v1865_v5 = vcombine.high %v653_v58, %v660_v59 }
 0x50a   :  { %v729_v6 = vrot.slane %v1863_v0, %v2231_v54  ;;  %v738_v7 = vcombine.low %v687_v52, %v694_v62  ;;  %v1864_v8 = vcombine.high %v687_v52, %v694_v62  ;;  %v1053_v35 = vmul.f32 %v2061_v25, %v2327_v24 }
 0x50b   :  { %v786_v9 = vcombine.low %v702_v63, %v709_v1  ;;  %v1866_v10 = vcombine.high %v702_v63, %v709_v1  ;;  %v769_v11 = vrot.slane %v762_v4, %v2231_v54  ;;  %v777_v12 = vrot.slane %v1865_v5, %v2231_v54 }
 0x50c   :  { %v730_v13 = vcombine.low %v721_v3, %v729_v6  ;;  %v745_v14 = vrot.slane %v738_v7, %v2231_v54  ;;  %v753_v16 = vrot.slane %v1864_v8, %v2231_v54  ;;  %v1057_v45 = vpack.c.bf16 %v1053_v35, %v1053_v35 }
 0x50d   :  { %v778_v17 = vcombine.low %v769_v11, %v777_v12  ;;  %v793_v18 = vrot.slane %v786_v9, %v2231_v54  ;;  %v801_v19 = vrot.slane %v1866_v10, %v2231_v54 }
 0x50e   :  { %v737_v20 = vrot.slane %v730_v13, %v2240_v2  ;;  %v754_v21 = vcombine.low %v745_v14, %v753_v16 }
 0x50f   :  { %v802_v27 = vcombine.low %v793_v18, %v801_v19  ;;  %v785_v28 = vrot.slane %v778_v17, %v2240_v2 }
 0x510   :  { %v761_v26 = vrot.slane %v754_v21, %v2240_v2  ;;  %v813_v31 = vshrl.u32 %v737_v20, 16 }
 0x511   :  { %v809_v29 = vrot.slane %v802_v27, %v2240_v2  ;;  %v819_v39 = vshrl.u32 %v785_v28, 16 }
 0x512   :  { %v812_v30 = vpack.i.b16 %v761_v26, %v737_v20  ;;  %v814_v33 = vshrl.u32 %v761_v26, 16 }
 0x513   :  { %v820_v42 = vshrl.u32 %v809_v29, 16  ;;  %v818_v38 = vpack.i.b16 %v809_v29, %v785_v28 }
 0x514   :  { %v1065_v36 = vsel %vm1063_vm4, %v812_v30, 0  ;;  %v815_v37 = vpack.i.b16 %v814_v33, %v813_v31 }
 0x515   :  { %1961 = vmatpush3.bf16.msra.mxu1 %v1065_v36  ;;  %v821_v44 = vpack.i.b16 %v820_v42, %v819_v39  ;;  %v1157_v22 = vsel %vm1063_vm4, %v818_v38, 0 }
 0x516   :  { %v1111_v40 = vsel %vm1063_vm4, %v815_v37, 0  ;;  %1972 = vmatprep.subr.bf16.mxu1 %v2098_v15 }
 0x517   :  { %1967 = vmatpush3.bf16.msra.mxu0 %v1111_v40  ;;  %v1203_v24 = vsel %vm1063_vm4, %v821_v44, 0 }
 0x518   :  { %1963 = vmatmul.mubr.msk.bf16.vlgmr.msra.gmra.mxu1 %vm1011_vm3, %v1056_v43  ;;  %1978 = vmatprep.subr.bf16.mxu0 %v2098_v15 }
 0x519   :  { %1973 = vmatpush3.bf16.msra.mxu1 %v1157_v22  ;;  %1974 = vmatprep.mubr.msk.bf16.mxu1 %vm2099_vm1, %v2098_v15 }
 0x51a   :  { %1969 = vmatmul.mubr.msk.bf16.vlgmr.msra.gmra.mxu0 %vm1011_vm3, %v1057_v45  ;;  %1984 = vmatprep.subr.bf16.mxu1 %v2098_v15 }
 0x51b   :  { %1979 = vmatpush3.bf16.msra.mxu0 %v1203_v24  ;;  %1980 = vmatprep.mubr.msk.bf16.mxu0 %vm2099_vm1, %v2098_v15 }
 0x51c   :  { %1992 = vmatprep.subr.bf16.mxu0 %v2098_v15 }
 0x527   :  { %v1044_v46 = vpop.xlane.xlu1 %1043 }
 0x528   :  { %2062 = vrcp.f32 %v1044_v46 }
 0x52f   :  { %v1047_v47 = vpop.xlane.xlu0 %1046 }
 0x530   :  { %2064 = vrcp.f32 %v1047_v47 }
 0x535   :  { %v2063_v48 = vpop.eup %2062 }
 0x536   :  { %v1054_v49 = vmul.f32 %v2063_v48, %v2333_v32  ;;  %v2035_v32 = vld [vmem:[%s2527_s5] sm:$0xff]   ;;  %s2106_s5 = smov 16  }
 0x538   :  { %v1058_v50 = vpack.c.bf16 %v1054_v49, %v1054_v49 }
 0x53a   :  { %1975 = vmatmul.mubr.msk.bf16.vlgmr.msra.gmra.mxu1 %vm1011_vm3, %v1058_v50 }
 0x53b   :  { %1988 = vmatprep.mubr.msk.bf16.mxu1 %vm2099_vm1, %v2098_v15  ;;  %1985 = vmatpush3.bf16.msra.mxu1 %v2034_v57 }
 0x53c   :  { %1986 = vmatprep.subr.bf16.mxu1 %v2098_v15 }
 0x53d   :  { %v2065_v53 = vpop.eup %2064 }
 0x53e   :  { %v1055_v55 = vmul.f32 %v2065_v53, %v2337_v34 }
 0x53f   :  { %1987 = vmatpush3.bf16.msra.mxu1 %v2035_v32 }
 0x540   :  { %v1059_v56 = vpack.c.bf16 %v1055_v55, %v1055_v55  ;;  %2000 = vmatprep.subr.bf16.mxu1 %v2098_v15 }
 0x542   :  { %1981 = vmatmul.mubr.msk.bf16.vlgmr.msra.gmra.mxu0 %vm1011_vm3, %v1059_v56 }
 0x543   :  { %1996 = vmatprep.mubr.msk.bf16.mxu0 %vm2099_vm1, %v2098_v15 }
 0x5d8   :  { %v1101_v34 = vpop.f32.mrf.mxu1 }
 0x5d9   :  { %v1245_v1 = vpack.c.bf16 %v1101_v34, %v1101_v34 }
 0x5da   :  { %v1964_v58 = vpop.f32.mrf.mxu1  ;;  %v1147_v59 = vpop.f32.mrf.mxu0 }
 0x5db   :  { %v1270_v0 = vpack.c.bf16 %v1147_v59, %v1147_v59  ;;  %v1252_v4 = vrot.slane %v1245_v1, %v2231_v54 }
 0x5dc   :  { %v1104_v60 = vpop.f32.mrf.mxu1  ;;  %v1970_v61 = vpop.f32.mrf.mxu0 }
 0x5dd   :  { %v1277_v3 = vrot.slane %v1270_v0, %v2231_v54  ;;  %v1253_v6 = vcombine.high %v1252_v4, %v2103_v51  ;;  %v1260_v14 = vrot.slane %v1252_v4, %v2240_v2 }
 0x5de   :  { %v1965_v52 = vpop.f32.mrf.mxu1  ;;  %v1150_v62 = vpop.f32.mrf.mxu0 }
 0x5df   :  { %v1278_v5 = vcombine.high %v1277_v3, %v2103_v51  ;;  %v1267_v10 = vrot.slane %v1253_v6, %v2240_v2  ;;  %v1285_v11 = vrot.slane %v1277_v3, %v2240_v2  ;;  %v1268_v23 = vcombine.high %v1260_v14, %v2103_v51 }
 0x5e0   :  { %v1971_v63 = vpop.f32.mrf.mxu0  ;;  %v1349_v37 = vshrl.u32 %v1260_v14, 16 }
 0x5e1   :  { %v1292_v7 = vrot.slane %v1278_v5, %v2240_v2  ;;  %v1269_v18 = vcombine.high %v1267_v10, %v2103_v51  ;;  %v1293_v19 = vcombine.high %v1285_v11, %v2103_v51  ;;  %v1365_v29 = vshrl.u32 %v1267_v10, 16 }
 0x5e2   :  { %v1350_v41 = vshrl.u32 %v1285_v11, 16  ;;  %v1357_v43 = vshrl.u32 %v1268_v23, 16  ;;  %v1347_v46 = vpack.i.b16 %v1285_v11, %v1260_v14 }
 0x5e3   :  { %v1294_v16 = vcombine.high %v1292_v7, %v2103_v51  ;;  %v1366_v27 = vshrl.u32 %v1292_v7, 16  ;;  %v1373_v33 = vshrl.u32 %v1269_v18, 16  ;;  %v1355_v35 = vpack.i.b16 %v1293_v19, %v1268_v23 }
 0x5e4   :  { %v1358_v42 = vshrl.u32 %v1293_v19, 16  ;;  %v1363_v38 = vpack.i.b16 %v1292_v7, %v1267_v10  ;;  %v1351_v50 = vpack.i.b16 %v1350_v41, %v1349_v37 }
 0x5e5   :  { %v1371_v25 = vpack.i.b16 %v1294_v16, %v1269_v18  ;;  %v1374_v26 = vshrl.u32 %v1294_v16, 16  ;;  %v1367_v44 = vpack.i.b16 %v1366_v27, %v1365_v29 }
 0x5e6   :  { %v1359_v53 = vpack.i.b16 %v1358_v42, %v1357_v43  ;;  %v1409_v56 = vcombine.low %v1347_v46, %v1363_v38 }
 0x5e7   :  { %v1375_v22 = vpack.i.b16 %v1374_v26, %v1373_v33  ;;  %v1417_v45 = vcombine.low %v1355_v35, %v1371_v25  ;;  %v1458_v58 = vcombine.low %v1351_v50, %v1367_v44  ;;  %v1875_v44 = vld [vmem:[%s2528_s6] ss:$0 sm:$0xff] }
 0x5e8   :  { %v1416_v10 = vrot.slane %v1409_v56, %v2231_v54 }
 0x5e9   :  { %v1466_v59 = vcombine.low %v1359_v53, %v1375_v22  ;;  %v1424_v61 = vrot.slane %v1417_v45, %v2231_v54  ;;  %v1465_v19 = vrot.slane %v1458_v58, %v2231_v54  ;;  %v2075_v53 = vld [vmem:[%s2522_s0 + $0x8] sm:$0xff] }
 0x5eb   :  { %v1473_v18 = vrot.slane %v1466_v59, %v2231_v54  ;;  %v1441_v27 = vcombine.low %v1416_v10, %v1424_v61 }
 0x5ed   :  { %v1490_v29 = vcombine.low %v1465_v19, %v1473_v18 }
 0x5ef   :  { %v1497_v35 = vrot.slane %v1490_v29, %v2240_v2  ;;  %v2045_v29 = vld [vmem:[%s2533_s11] sm:$0xff]  }
 0x5fa   :  { %v1193_v8 = vpop.f32.mrf.mxu1 }
 0x5fb   :  { %v1295_v9 = vpack.c.bf16 %v1193_v8, %v1193_v8 }
 0x5fc   :  { %v1976_v12 = vpop.f32.mrf.mxu1 }
 0x5fd   :  { %v1302_v13 = vrot.slane %v1295_v9, %v2231_v54 }
 0x5fe   :  { %v1196_v17 = vpop.f32.mrf.mxu1 }
 0x5ff   :  { %v1303_v21 = vcombine.high %v1302_v13, %v2103_v51  ;;  %v1310_v30 = vrot.slane %v1302_v13, %v2240_v2 }
 0x600   :  { %v1977_v20 = vpop.f32.mrf.mxu1 }
 0x601   :  { %v1317_v39 = vrot.slane %v1303_v21, %v2240_v2  ;;  %v1318_v47 = vcombine.high %v1310_v30, %v2103_v51  ;;  %v1381_v52 = vshrl.u32 %v1310_v30, 16 }
 0x602   :  { %v1239_v28 = vpop.f32.mrf.mxu0 }
 0x603   :  { %v1320_v31 = vpack.c.bf16 %v1239_v28, %v1239_v28  ;;  %v1319_v57 = vcombine.high %v1317_v39, %v2103_v51  ;;  %v1389_v62 = vshrl.u32 %v1318_v47, 16  ;;  %v1397_v1 = vshrl.u32 %v1317_v39, 16 }
 0x604   :  { %v1982_v36 = vpop.f32.mrf.mxu0 }
 0x605   :  { %v1327_v40 = vrot.slane %v1320_v31, %v2231_v54  ;;  %v1405_v6 = vshrl.u32 %v1319_v57, 16 }
 0x606   :  { %v1242_v24 = vpop.f32.mrf.mxu0 }
 0x607   :  { %v1328_v48 = vcombine.high %v1327_v40, %v2103_v51  ;;  %v1335_v49 = vrot.slane %v1327_v40, %v2240_v2  ;;  %v2074_v24 = vld [vmem:[%s2522_s0] sm:$0xff]  ;;  %s1838_s0 = sshll.u32 %s2107_s30, 4  ;;  %s1839_s0 = int_to_ptr.vmem [resolvable:$true] %s1838_s0 }
 0x608   :  { %v1983_v55 = vpop.f32.mrf.mxu0  ;;  %s2076_s6 = scalar_lea.vmem %s1839_s0, 256  ;;  %p2081_p1 = scmp.lt.s32.totalorder %s1839_s0, %s1839_s0 }
 0x609   :  { %v1342_v32 = vrot.slane %v1328_v48, %v2240_v2  ;;  %v1343_v34 = vcombine.high %v1335_v49, %v2103_v51  ;;  %v1382_v60 = vshrl.u32 %v1335_v49, 16  ;;  %v1379_v3 = vpack.i.b16 %v1335_v49, %v1310_v30  ;;  %p2077_p0 = scmp.ne.s32.totalorder %s1839_s0, %s2076_s6  ;;  %p2082_p2 = scmp.lt.s32.totalorder %s2076_s6, %s2076_s6 }
 0x60a   :  { %v1448_v30 = vrot.slane %v1441_v27, %v2240_v2  ;;  %v2041_v27 = vld [vmem:[%s2533_s11 + $0x20] sm:$0xff]  }
 0x60b   :  { %v1344_v63 = vcombine.high %v1342_v32, %v2103_v51  ;;  %v1390_v0 = vshrl.u32 %v1343_v34, 16  ;;  %v1395_v4 = vpack.i.b16 %v1342_v32, %v1317_v39  ;;  %v1398_v5 = vshrl.u32 %v1342_v32, 16  ;;  %p2083_p3 = por %p2082_p2, %p2081_p1 }
 0x60c   :  { %v1387_v7 = vpack.i.b16 %v1343_v34, %v1318_v47  ;;  %v1383_v11 = vpack.i.b16 %v1382_v60, %v1381_v52 }
 0x60d   :  { %v1403_v8 = vpack.i.b16 %v1344_v63, %v1319_v57  ;;  %v1406_v9 = vshrl.u32 %v1344_v63, 16  ;;  %v1399_v12 = vpack.i.b16 %v1398_v5, %v1397_v1  ;;  %v1425_v13 = vcombine.low %v1379_v3, %v1395_v4  ;;  %v2037_v1 = vld [vmem:[%s2531_s9] sm:$0xff]   ;;  %p2084_p4 = pnand %p2083_p3, %p2077_p0 }
 0x60e   :  { %v1391_v14 = vpack.i.b16 %v1390_v0, %v1389_v62  ;;  %v2036_v0 = vld [vmem:[%s2531_s9 + $0x8] sm:$0xff]  }
 0x60f   :  { %v1407_v16 = vpack.i.b16 %v1406_v9, %v1405_v6  ;;  %v1433_v17 = vcombine.low %v1387_v7, %v1403_v8  ;;  %v1474_v51 = vcombine.low %v1383_v11, %v1399_v12  ;;  %v1432_v20 = vrot.slane %v1425_v13, %v2231_v54  ;;  %1993 = vmatpush3.bf16.msra.mxu0 %v2036_v0  ;;  %v1879_v11 = vld [vmem:[%s2529_s7] ss:$0 sm:$0xff] }
 0x610   :  { %1994 = vmatprep.subr.bf16.mxu0 %v2098_v15 }
 0x611   :  { %v1482_v21 = vcombine.low %v1391_v14, %v1407_v16  ;;  %v1440_v23 = vrot.slane %v1433_v17, %v2231_v54  ;;  %v1481_v26 = vrot.slane %v1474_v51, %v2231_v54  ;;  %v1880_v16 = vld [vmem:[%s2530_s8] ss:$0 sm:$0xff] }
 0x613   :  { %v1449_v25 = vcombine.low %v1432_v20, %v1440_v23  ;;  %v1489_v28 = vrot.slane %v1482_v21, %v2231_v54  ;;  %1995 = vmatpush3.bf16.msra.mxu0 %v2037_v1  ;;  %v2038_v20 = vld [vmem:[%s2533_s11 + $0x38] sm:$0xff]   ;;  %v2039_v21 = vld [vmem:[%s2533_s11 + $0x30] sm:$0xff]   ;;  %v2040_v23 = vld [vmem:[%s2533_s11 + $0x28] sm:$0xff]  }
 0x615   :  { %v1456_v31 = vrot.slane %v1449_v25, %v2240_v2  ;;  %v1498_v33 = vcombine.low %v1481_v26, %v1489_v28  ;;  %v2042_v25 = vld [vmem:[%s2533_s11 + $0x18] sm:$0xff]   ;;  %v2043_v26 = vld [vmem:[%s2533_s11 + $0x10] sm:$0xff]   ;;  %v2044_v28 = vld [vmem:[%s2533_s11 + $0x8] sm:$0xff]  }
 0x617   :  { %v1457_v41 = vcombine.low %v1448_v30, %v1456_v31  ;;  %v1505_v42 = vrot.slane %v1498_v33, %v2240_v2  ;;  %v1881_v30 = vld [vmem:[%s2532_s10] ss:$0 sm:$0xff] }
 0x619   :  { %v1506_v36 = vcombine.low %v1497_v35, %v1505_v42  ;;  %v1510_v37 = vshrl.u32 %v1457_v41, 16 }
 0x61b   :  { %v1511_v38 = vshrl.u32 %v1506_v36, 16  ;;  %v1509_v39 = vpack.i.b16 %v1506_v36, %v1457_v41 }
 0x61d   :  { %v1512_v40 = vpack.i.b16 %v1511_v38, %v1510_v37 }
 0x61f   :  { %1513 = vrot.lane.b32.xlu1 %v1512_v40, %s2106_s5 }
 0x691   :  { %v1514_v43 = vpop.permute.xlu1 %1513 }
 0x692   :  { %v1517_v54 = vsel %vm822_vm2, %v1509_v39, %v1514_v43 }
 0x693   :  { %1989 = vmatmul.mubr.msk.bf16.vlgmr.msra.gmra.mxu1 %vm50_vm0, %v1517_v54 }
 0x694   :  { %2016 = vmatprep.mubr.msk.bf16.mxu1 %vm2099_vm1, %v2098_v15  ;;  %2001 = vmatpush3.bf16.msra.mxu1 %v2038_v20 }
 0x695   :  { %2002 = vmatprep.subr.bf16.mxu1 %v2098_v15 }
 0x698   :  { %2003 = vmatpush3.bf16.msra.mxu1 %v2039_v21 }
 0x699   :  { %2004 = vmatprep.subr.bf16.mxu1 %v2098_v15 }
 0x69c   :  { %2005 = vmatpush3.bf16.msra.mxu1 %v2040_v23 }
 0x69d   :  { %2006 = vmatprep.subr.bf16.mxu1 %v2098_v15 }
 0x6a0   :  { %2007 = vmatpush3.bf16.msra.mxu1 %v2041_v27 }
 0x6a1   :  { %2008 = vmatprep.subr.bf16.mxu1 %v2098_v15 }
 0x6a4   :  { %2009 = vmatpush3.bf16.msra.mxu1 %v2042_v25 }
 0x6a5   :  { %2010 = vmatprep.subr.bf16.mxu1 %v2098_v15 }
 0x6a8   :  { %2011 = vmatpush3.bf16.msra.mxu1 %v2043_v26 }
 0x6a9   :  { %2012 = vmatprep.subr.bf16.mxu1 %v2098_v15 }
 0x6ac   :  { %2013 = vmatpush3.bf16.msra.mxu1 %v2044_v28 }
 0x6ad   :  { %2014 = vmatprep.subr.bf16.mxu1 %v2098_v15 }
 0x6b0   :  { %2015 = vmatpush3.bf16.msra.mxu1 %v2045_v29 }
 0x753   :  { %v1577_v2 = vpop.f32.mrf.mxu1 }
 0x754   :  { %v1578_v22 = vadd.f32 %v1875_v44, %v1577_v2 }
 0x755   :  { %v1990_v45 = vpop.f32.mrf.mxu1 }
 0x756   :  { %v2449_v46 = vadd.f32 %v2074_v24, %v1578_v22 }
 0x757   :  { %v1580_v47 = vpop.f32.mrf.mxu1 }
 0x758   :  { %v1581_v48 = vadd.f32 %v1875_v44, %v1580_v47  ;;  %v1588_v49 = vsel %vm50_vm0, %v2449_v46, 0.0 }
 0x759   :  { %1589 = vadd.xlane.f32.xlu0 %v1588_v49  ;;  %v1991_v50 = vpop.f32.mrf.mxu1 }
 0x75a   :  { %v2456_v55 = vadd.f32 %v2075_v53, %v1581_v48 }
 0x75c   :  { %v1591_v56 = vsel %vm50_vm0, %v2456_v55, 0.0 }
 0x75d   :  { %1592 = vadd.xlane.f32.xlu0 %v1591_v56 }
 0x7e2   :  { %v1590_v57 = vpop.xlane.xlu0 %1589 }
 0x7e3   :  { %v1594_v32 = vmul.f32 0.03125, %v1590_v57 }
 0x7e5   :  { %v1596_v34 = vsub.f32 %v2449_v46, %v1594_v32  ;;  %v1885_v32 = vld [vmem:[%s2534_s12] ss:$0 sm:$0xff] }
 0x7e6   :  { %v1593_v58 = vpop.xlane.xlu0 %1592 }
 0x7e7   :  { %v1595_v59 = vmul.f32 0.03125, %v1593_v58  ;;  %v1598_v60 = vmul.f32 %v1596_v34, %v1596_v34 }
 0x7e9   :  { %v1597_v61 = vsub.f32 %v2456_v55, %v1595_v59  ;;  %v1600_v52 = vsel %vm50_vm0, %v1598_v60, 0.0 }
 0x7ea   :  { %1601 = vadd.xlane.f32.xlu0 %v1600_v52 }
 0x7eb   :  { %v1599_v62 = vmul.f32 %v1597_v61, %v1597_v61 }
 0x7ed   :  { %v1603_v63 = vsel %vm50_vm0, %v1599_v62, 0.0 }
 0x7ee   :  { %1604 = vadd.xlane.f32.xlu0 %v1603_v63 }
 0x873   :  { %v1602_v3 = vpop.xlane.xlu0 %1601 }
 0x874   :  { %v1606_v4 = vmul.f32 0.03125, %v1602_v3 }
 0x876   :  { %v1608_v5 = vadd.f32 1e-05, %v1606_v4 }
 0x877   :  { %v1605_v6 = vpop.xlane.xlu0 %1604 }
 0x878   :  { %2066 = vrsqrt.f32 %v1608_v5  ;;  %v1607_v7 = vmul.f32 0.03125, %v1605_v6 }
 0x87a   :  { %v1609_v8 = vadd.f32 1e-05, %v1607_v7 }
 0x87c   :  { %2068 = vrsqrt.f32 %v1609_v8 }
 0x885   :  { %v2067_v9 = vpop.eup %2066 }
 0x886   :  { %v1612_v10 = vmul.f32 %v2067_v9, %v1596_v34 }
 0x888   :  { %v1620_v14 = vmul.f32 %v1879_v11, %v1612_v10 }
 0x889   :  { %v2069_v12 = vpop.eup %2068 }
 0x88a   :  { %v1613_v13 = vmul.f32 %v2069_v12, %v1597_v61  ;;  %v1628_v18 = vadd.f32 %v1880_v16, %v1620_v14 }
 0x88c   :  { %v1621_v17 = vmul.f32 %v1879_v11, %v1613_v13 }
 0x88e   :  { %v1629_v51 = vadd.f32 %v1880_v16, %v1621_v17 }
 0x890   :  { %v1630_v19 = vpack.c.bf16 %v1629_v51, %v1628_v18 }
 0x892   :  { %1997 = vmatmul.mubr.msk.bf16.vlgmr.msra.gmra.mxu0 %vm50_vm0, %v1630_v19 }
 0x952   :  { %v1691_v31 = vpop.f32.mrf.mxu0 }
 0x953   :  { %v1692_v33 = vadd.f32 %v1881_v30, %v1691_v31 }
 0x954   :  { %v1998_v41 = vpop.f32.mrf.mxu0 }
 0x955   :  { %v1700_v35 = vmul.f32 0.044715, %v1692_v33  ;;  %v1698_v48 = vmul.f32 0.5, %v1692_v33 }
 0x956   :  { %v1694_v42 = vpop.f32.mrf.mxu0 }
 0x957   :  { %v1702_v36 = vmul.f32 %v1700_v35, %v1692_v33  ;;  %v1695_v37 = vadd.f32 %v1881_v30, %v1694_v42 }
 0x958   :  { %v1999_v38 = vpop.f32.mrf.mxu0 }
 0x959   :  { %v1704_v39 = vmul.f32 %v1702_v36, %v1692_v33  ;;  %v1701_v40 = vmul.f32 0.044715, %v1695_v37  ;;  %v1699_v49 = vmul.f32 0.5, %v1695_v37 }
 0x95b   :  { %v1706_v43 = vadd.f32 %v1704_v39, %v1692_v33  ;;  %v1703_v54 = vmul.f32 %v1701_v40, %v1695_v37 }
 0x95d   :  { %v1708_v44 = vmul.f32 0.7978846, %v1706_v43  ;;  %v1705_v2 = vmul.f32 %v1703_v54, %v1695_v37 }
 0x95f   :  { %2070 = vtanh.f32 %v1708_v44  ;;  %v1707_v15 = vadd.f32 %v1705_v2, %v1695_v37 }
 0x961   :  { %v1709_v22 = vmul.f32 0.7978846, %v1707_v15 }
 0x963   :  { %2072 = vtanh.f32 %v1709_v22 }
 0x96c   :  { %v2071_v45 = vpop.eup %2070 }
 0x96d   :  { %v1712_v24 = vadd.f32 1.0, %v2071_v45 }
 0x96f   :  { %v1714_v53 = vmul.f32 %v1712_v24, %v1698_v48 }
 0x970   :  { %v2073_v47 = vpop.eup %2072 }
 0x971   :  { %v1713_v50 = vadd.f32 1.0, %v2073_v47 }
 0x973   :  { %v1715_v56 = vmul.f32 %v1713_v50, %v1699_v49 }
 0x975   :  { %v1716_v57 = vpack.c.bf16 %v1715_v56, %v1714_v53 }
 0x977   :  { %2017 = vmatmul.mubr.bf16.vlgmr.msra.gmra.mxu1 %v1716_v57 }
 0xa37   :  { %v1822_v34 = vpop.f32.mrf.mxu1 }
 0xa38   :  { %v1823_v58 = vadd.f32 %v1885_v32, %v1822_v34 }
 0xa39   :  { %v2018_v59 = vpop.f32.mrf.mxu1 }
 0xa3a   :  { %v1829_v60 = vadd.f32 %v1823_v58, %v2449_v46 }
 0xa3b   :  { %v1825_v61 = vpop.f32.mrf.mxu1 }
 0xa3c   :  { %1831 = vst.msk [vmem:[#allocation2] sm:$0xff] %vm50_vm0, %v1829_v60  ;;  %v1826_v52 = vadd.f32 %v1885_v32, %v1825_v61 }
 0xa3d   :  { %v2019_v62 = vpop.f32.mrf.mxu1 }
 0xa3e   :  { %v1830_v63 = vadd.f32 %v1826_v52, %v2456_v55 }
 0xa40   :  { %1832 = vst.msk [vmem:[#allocation2 + $0x8] sm:$0xff] %vm50_vm0, %v1830_v63 }
 0xa41   :  { %2087 = shalt.err (!%p2084_p4)
}
 0xa42   :  { %s2108_s12 = smov 128   ;;  %s2109_s14 = smov 8  }
 0xa43   :  { %1844 = dma.vmem_to_hbm [thread:$0]  %s1839_s0, 256, %s2535_s13, [#allocation3], %s2108_s12, %s2108_s12, %s2109_s14  }
 0xa44   :  { %2096 = dma.done.wait [#allocation3], 256  }
 0xa45   :  { %2097 = vsyncadd [#allocation3], 4294967040 }
 0xa46   :  { %1848 = vsyncpa [#allocation3], 1 }

</bundles_post_ra>
